<compile_context>
chip_gen: v7x
topology: tpu7x:2x2x1
jax: 0.10.0
libtpu: 0.0.40
codegen_flags: <defaults>
</compile_context>

<pallas_src>
import jax
import jax.numpy as jnp
from jax.experimental import pallas as pl
from jax.experimental.pallas import tpu as pltpu

EPS = 1e-5


def qbnlstm_chunk_kernel(
    # inputs
    x_ref, h0_ref, c0_ref, wih_ref, whh_ref,
    s_ih_ref, s_hh_ref, row_ref, s_c_ref, b_c_ref,
    # outputs
    h_seq_ref, c_seq_ref,
    # scratch (state carried across time chunks)
    h_scr, c_scr,
):
    chunk = pl.program_id(1)

    @pl.when(chunk == 0)
    def _init():
        h_scr[...] = h0_ref[...].astype(jnp.float32)
        c_scr[...] = c0_ref[...].astype(jnp.float32)

    Tc = x_ref.shape[0]
    H = h_scr.shape[1]
    mm_dtype = wih_ref.dtype

    # Hoist resident weights once per chunk (VMEM -> vreg loads, no re-DMA).
    w_ih = wih_ref[...]
    w_hh = whh_ref[...]

    h = h_scr[...]
    c = c_scr[...]

    # Static (fully unrolled) inner loop over the Tc timesteps of this chunk.
    for s in range(Tc):
        x_t = x_ref[s]                                              # (B, K)
        wi = jnp.dot(x_t, w_ih, preferred_element_type=jnp.float32)          # (B, 4H)
        wh = jnp.dot(h.astype(mm_dtype), w_hh,
                     preferred_element_type=jnp.float32)                      # (B, 4H)

        si = s_ih_ref[pl.ds(s, 1)]                                  # (1, 4H)
        sh = s_hh_ref[pl.ds(s, 1)]                                  # (1, 4H)
        rw = row_ref[pl.ds(s, 1)]                                   # (1, 4H)

        # BN already folded to scale/shift; f/i/o columns carry an extra 0.5 so
        # one tanh pass serves both sigmoid (0.5*tanh(x/2)+0.5) and tanh gates.
        gates = wi * si + wh * sh + rw                              # (B, 4H)
        t_all = jnp.tanh(gates)
        sig = 0.5 * t_all + 0.5

        f = sig[:, 0 * H:1 * H]
        i = sig[:, 1 * H:2 * H]
        o = sig[:, 2 * H:3 * H]
        g = t_all[:, 3 * H:4 * H]

        c = f * c + i * g                                           # (B, H)
        bn_c = c * s_c_ref[pl.ds(s, 1)] + b_c_ref[pl.ds(s, 1)]
        h = o * jnp.tanh(bn_c)

        # H < 128 keeps these stores masked (vst.msk); the actual HBM writeback
        # DMA happens once per chunk via the (Tc, B, H) output block.
        h_seq_ref[s] = h.astype(h_seq_ref.dtype)
        c_seq_ref[s] = c.astype(c_seq_ref.dtype)

    h_scr[...] = h
    c_scr[...] = c


def qbnlstm_sequence(x_seq, h0, c0, params, t0=0, *, time_chunk=8,
                     matmul_dtype=jnp.bfloat16, batch_shards=1,
                     vmem_limit_bytes=None):
    """Run T fused BN-LSTM cell steps.

    x_seq: (T, B, input_size);  h0, c0: (B, H).
    BN running stats for step s use timestep min(t0 + s, max_length - 1),
    matching the PyTorch module's clamping.  Returns (h_seq, c_seq), (T, B, H).
    """
    T, B, K = x_seq.shape
    H = h0.shape[1]
    FH = 4 * H
    L = params["bn_ih_mean"].shape[0]
    t0 = int(t0)

    # ---- fold each BN into per-timestep scale/shift tables (once, in XLA) ----
    def fold(mean, var, gamma, beta):
        scale = gamma[None, :] * jax.lax.rsqrt(var + EPS)           # (L, F)
        shift = beta[None, :] - mean * scale                        # (L, F)
        return scale, shift

    s_ih, b_ih = fold(params["bn_ih_mean"], params["bn_ih_var"],
                      params["bn_ih_gamma"], params["bn_ih_beta"])  # (L, 4H)
    s_hh, b_hh = fold(params["bn_hh_mean"], params["bn_hh_var"],
                      params["bn_hh_gamma"], params["bn_hh_beta"])  # (L, 4H)
    s_c, b_c = fold(params["bn_c_mean"], params["bn_c_var"],
                    params["bn_c_gamma"], params["bn_c_beta"])      # (L, H)
    row = b_ih + b_hh + params["bias"][None, :]                     # (L, 4H)

    # Fold 0.5 into the f/i/o (first 3H) columns: sigmoid(x) = 0.5*tanh(x/2)+0.5.
    half = jnp.concatenate([jnp.full((3 * H,), 0.5, jnp.float32),
                            jnp.ones((H,), jnp.float32)])
    s_ih, s_hh, row = s_ih * half, s_hh * half, row * half

    # ---- time chunking (Tc steps per grid iteration) ----
    Tc = max(1, min(int(time_chunk), T))
    if Tc < T:                       # multi-chunk: Tc must be a multiple of 8
        Tc = max(8, (Tc // 8) * 8)
        if Tc >= T:
            Tc = T
    n_chunks = (T + Tc - 1) // Tc
    T_pad = n_chunks * Tc

    # Per-step gather of the BN tables with the module's min(t, L-1) clamp.
    idx = jnp.minimum(jnp.arange(T_pad) + t0, L - 1)
    s_ih_steps, s_hh_steps, row_steps = s_ih[idx], s_hh[idx], row[idx]
    s_c_steps, b_c_steps = s_c[idx], b_c[idx]

    if T_pad != T:                   # padded tail is computed then sliced off
        x_seq = jnp.concatenate(
            [x_seq, jnp.zeros((T_pad - T, B, K), x_seq.dtype)], axis=0)

    x_seq = x_seq.astype(matmul_dtype)
    w_ih = params["weight_ih"].astype(matmul_dtype)
    w_hh = params["weight_hh"].astype(matmul_dtype)
    h0 = h0.astype(jnp.float32)
    c0 = c0.astype(jnp.float32)

    # ---- optional batch sharding across TensorCores (v7x megacore) ----
    P = int(batch_shards)
    if P < 1 or B % P != 0 or (P > 1 and (B // P) % 8 != 0):
        P = 1
    Bs = B // P

    def const(shape):
        n = len(shape)
        return pl.BlockSpec(shape, lambda p, t, _n=n: (0,) * _n)

    in_specs = [
        pl.BlockSpec((Tc, Bs, K), lambda p, t: (t, p, 0)),   # x chunk
        pl.BlockSpec((Bs, H), lambda p, t: (p, 0)),          # h0
        pl.BlockSpec((Bs, H), lambda p, t: (p, 0)),          # c0
        const((K, FH)),                                      # W_ih (resident)
        const((H, FH)),                                      # W_hh (resident)
        pl.BlockSpec((Tc, FH), lambda p, t: (t, 0)),         # s_ih rows
        pl.BlockSpec((Tc, FH), lambda p, t: (t, 0)),         # s_hh rows
        pl.BlockSpec((Tc, FH), lambda p, t: (t, 0)),         # row  rows
        pl.BlockSpec((Tc, H), lambda p, t: (t, 0)),          # s_c rows
        pl.BlockSpec((Tc, H), lambda p, t: (t, 0)),          # b_c rows
    ]
    out_specs = (
        pl.BlockSpec((Tc, Bs, H), lambda p, t: (t, p, 0)),
        pl.BlockSpec((Tc, Bs, H), lambda p, t: (t, p, 0)),
    )

    if vmem_limit_bytes is None:
        # Rough residency estimate (double-buffered streams + resident weights),
        # with headroom; capped at 64 MiB to stay within v7x physical VMEM.
        elt = jnp.dtype(matmul_dtype).itemsize
        est = (2 * (Tc * Bs * K * elt + 3 * Tc * FH * 4 + 2 * Tc * H * 4
                    + 2 * Tc * Bs * H * 4)
               + (K + H) * FH * elt + 4 * Bs * H * 4)
        vmem_limit_bytes = int(min(max(2 * est, 32 * 2**20), 64 * 2**20))

    h_seq, c_seq = pl.pallas_call(
        qbnlstm_chunk_kernel,
        out_shape=(jax.ShapeDtypeStruct((T_pad, B, H), jnp.float32),
                   jax.ShapeDtypeStruct((T_pad, B, H), jnp.float32)),
        grid_spec=pltpu.PrefetchScalarGridSpec(
            num_scalar_prefetch=0,
            grid=(P, n_chunks),
            in_specs=in_specs,
            out_specs=out_specs,
            scratch_shapes=[pltpu.VMEM((Bs, H), jnp.float32),   # h carry
                            pltpu.VMEM((Bs, H), jnp.float32)],  # c carry
        ),
        compiler_params=pltpu.CompilerParams(
            dimension_semantics=("parallel", "arbitrary"),
            vmem_limit_bytes=vmem_limit_bytes),
    )(x_seq, h0, c0, w_ih, w_hh,
      s_ih_steps, s_hh_steps, row_steps, s_c_steps, b_c_steps)

    return h_seq[:T], c_seq[:T]


def qbnlstm_cell(x, h0, c0, params, time, **kw):
    """Single BN-LSTM cell step (API parity with the PyTorch module's forward).
    `time` must be a Python int (it selects the BN running-stat row)."""
    h_seq, c_seq = qbnlstm_sequence(x[None], h0, c0, params, t0=int(time), **kw)
    return h_seq[0], c_seq[0]


def init_params(key, input_size, hidden_size, max_length):
    """Deterministic parameter init mirroring QBNLSTMCell.reset_parameters()."""
    four_h = 4 * hidden_size
    w_ih = jax.nn.initializers.orthogonal()(key, (input_size, four_h), jnp.float32)
    w_hh = jnp.tile(jnp.eye(hidden_size, dtype=jnp.float32), (1, 4))
    bias = jnp.zeros((four_h,), jnp.float32)
    return {
        "weight_ih": w_ih,
        "weight_hh": w_hh,
        "bias": bias,
        "bn_ih_mean": jnp.zeros((max_length, four_h), jnp.float32),
        "bn_ih_var": jnp.ones((max_length, four_h), jnp.float32),
        "bn_ih_gamma": jnp.full((four_h,), 0.1, jnp.float32),
        "bn_ih_beta": jnp.zeros((four_h,), jnp.float32),
        "bn_hh_mean": jnp.zeros((max_length, four_h), jnp.float32),
        "bn_hh_var": jnp.ones((max_length, four_h), jnp.float32),
        "bn_hh_gamma": jnp.full((four_h,), 0.1, jnp.float32),
        "bn_hh_beta": jnp.zeros((four_h,), jnp.float32),
        "bn_c_mean": jnp.zeros((max_length, hidden_size), jnp.float32),
        "bn_c_var": jnp.ones((max_length, hidden_size), jnp.float32),
        "bn_c_gamma": jnp.full((hidden_size,), 0.1, jnp.float32),
        "bn_c_beta": jnp.zeros((hidden_size,), jnp.float32),
    }


def _reference_step(x, h, c, params, t):
    """Pure-JAX reference of the PyTorch forward (eval mode) for one step."""
    def bn(v, mean, var, gamma, beta):
        return (v - mean) * jax.lax.rsqrt(var + EPS) * gamma + beta

    wh = h @ params["weight_hh"]
    wi = x @ params["weight_ih"]
    bn_wh = bn(wh, params["bn_hh_mean"][t], params["bn_hh_var"][t],
               params["bn_hh_gamma"], params["bn_hh_beta"])
    bn_wi = bn(wi, params["bn_ih_mean"][t], params["bn_ih_var"][t],
               params["bn_ih_gamma"], params["bn_ih_beta"])
    gates = bn_wh + bn_wi + params["bias"][None, :]
    H = h.shape[1]
    f, i, o, g = (gates[:, k * H:(k + 1) * H] for k in range(4))
    c1 = jax.nn.sigmoid(f) * c + jax.nn.sigmoid(i) * jnp.tanh(g)
    bn_c1 = bn(c1, params["bn_c_mean"][t], params["bn_c_var"][t],
               params["bn_c_gamma"], params["bn_c_beta"])
    h1 = jax.nn.sigmoid(o) * jnp.tanh(bn_c1)
    return h1, c1


def _reference_sequence(x_seq, h0, c0, params, t0=0):
    L = params["bn_ih_mean"].shape[0]
    h, c = h0, c0
    hs, cs = [], []
    for s in range(x_seq.shape[0]):
        t = min(s + t0, L - 1)
        h, c = _reference_step(x_seq[s], h, c, params, t)
        hs.append(h)
        cs.append(c)
    return jnp.stack(hs), jnp.stack(cs)


if __name__ == "__main__":
    B, INPUT, HIDDEN, MAXLEN, T = 8, 16, 32, 8, 10   # T > MAXLEN exercises the clamp

    key = jax.random.PRNGKey(0)
    k_w, k_x, k_h, k_c, k_m1, k_v1, k_m2, k_v2, k_m3, k_v3 = jax.random.split(key, 10)

    params = init_params(k_w, INPUT, HIDDEN, MAXLEN)
    # Perturb running statistics (as if after training) so the per-timestep BN
    # selection and clamping are exercised.
    params["bn_ih_mean"] = 0.1 * jax.random.normal(k_m1, (MAXLEN, 4 * HIDDEN), jnp.float32)
    params["bn_ih_var"] = jax.random.uniform(k_v1, (MAXLEN, 4 * HIDDEN), jnp.float32, 0.5, 1.5)
    params["bn_hh_mean"] = 0.1 * jax.random.normal(k_m2, (MAXLEN, 4 * HIDDEN), jnp.float32)
    params["bn_hh_var"] = jax.random.uniform(k_v2, (MAXLEN, 4 * HIDDEN), jnp.float32, 0.5, 1.5)
    params["bn_c_mean"] = 0.1 * jax.random.normal(k_m3, (MAXLEN, HIDDEN), jnp.float32)
    params["bn_c_var"] = jax.random.uniform(k_v3, (MAXLEN, HIDDEN), jnp.float32, 0.5, 1.5)

    x_seq = jax.random.normal(k_x, (T, B, INPUT), jnp.float32)
    h0 = jax.random.normal(k_h, (B, HIDDEN), jnp.float32)
    c0 = jax.random.normal(k_c, (B, HIDDEN), jnp.float32)

    h_ref, c_ref = _reference_sequence(x_seq, h0, c0, params, t0=0)

    # 1) Strict-numerics path (f32 matmul operands): must match to 1e-4.
    h_seq, c_seq = qbnlstm_sequence(x_seq, h0, c0, params, t0=0,
                                    matmul_dtype=jnp.float32)
    jax.block_until_ready((h_seq, c_seq))
    assert jnp.allclose(h_seq, h_ref, atol=1e-4, rtol=1e-4)
    assert jnp.allclose(c_seq, c_ref, atol=1e-4, rtol=1e-4)

    # 2) Default fast path (bf16 MXU operands, f32 accumulation).
    h_bf, c_bf = qbnlstm_sequence(x_seq, h0, c0, params, t0=0)
    jax.block_until_ready((h_bf, c_bf))
    assert jnp.allclose(h_bf, h_ref, atol=5e-3, rtol=5e-3)
    assert jnp.allclose(c_bf, c_ref, atol=5e-3, rtol=5e-3)

    # 3) Single-step API (matches the PyTorch module's forward signature).
    h1, c1 = qbnlstm_cell(x_seq[0], h0, c0, params, time=3,
                          matmul_dtype=jnp.float32)
    h1_ref, c1_ref = _reference_step(x_seq[0], h0, c0, params, 3)
    assert jnp.allclose(h1, h1_ref, atol=1e-4, rtol=1e-4)
    assert jnp.allclose(c1, c1_ref, atol=1e-4, rtol=1e-4)

    # TODO(synk): training-mode batch_norm (batch statistics + momentum updates
    # of the per-timestep running buffers) is not implemented; eval-mode only.
    print("KERNEL_OK")
</pallas_src>

<mosaic_0001>
module attributes {stable_mosaic.version = 11 : i64} {
  func.func @qbnlstm_chunk_kernel(%arg0: i32, %arg1: i32, %arg2: memref<8x8x16xf32, #tpu.memory_space<vmem>>, %arg3: memref<8x32xf32, #tpu.memory_space<vmem>>, %arg4: memref<8x32xf32, #tpu.memory_space<vmem>>, %arg5: memref<16x128xf32, #tpu.memory_space<vmem>>, %arg6: memref<32x128xf32, #tpu.memory_space<vmem>>, %arg7: memref<8x128xf32, #tpu.memory_space<vmem>>, %arg8: memref<8x128xf32, #tpu.memory_space<vmem>>, %arg9: memref<8x128xf32, #tpu.memory_space<vmem>>, %arg10: memref<8x32xf32, #tpu.memory_space<vmem>>, %arg11: memref<8x32xf32, #tpu.memory_space<vmem>>, %arg12: memref<8x8x32xf32, #tpu.memory_space<vmem>>, %arg13: memref<8x8x32xf32, #tpu.memory_space<vmem>>, %arg14: memref<8x32xf32, #tpu.memory_space<vmem>>, %arg15: memref<8x32xf32, #tpu.memory_space<vmem>>) attributes {dimension_semantics = [#tpu.dimension_semantics<parallel>, #tpu.dimension_semantics<arbitrary>], iteration_bounds = array<i64: 1, 2>, scalar_prefetch = 0 : i64, scratch_operands = 2 : i64, tpu.core_type = #tpu.core_type<tc>, window_params = [{transform_indices = @transform_0, window_bounds = array<i64: 8, 8, 16>}, {transform_indices = @transform_1, window_bounds = array<i64: 8, 32>}, {transform_indices = @transform_2, window_bounds = array<i64: 8, 32>}, {pipeline_mode = #tpu.pipeline_mode<synchronous>, transform_indices = @transform_3, window_bounds = array<i64: 16, 128>}, {pipeline_mode = #tpu.pipeline_mode<synchronous>, transform_indices = @transform_4, window_bounds = array<i64: 32, 128>}, {transform_indices = @transform_5, window_bounds = array<i64: 8, 128>}, {transform_indices = @transform_6, window_bounds = array<i64: 8, 128>}, {transform_indices = @transform_7, window_bounds = array<i64: 8, 128>}, {transform_indices = @transform_8, window_bounds = array<i64: 8, 32>}, {transform_indices = @transform_9, window_bounds = array<i64: 8, 32>}, {transform_indices = @transform_10, window_bounds = array<i64: 8, 8, 32>}, {transform_indices = @transform_11, window_bounds = array<i64: 8, 8, 32>}]} {
    %c0_i32 = arith.constant 0 : i32
    %0 = arith.cmpi eq, %arg1, %c0_i32 : i32
    %1 = arith.extui %0 : i1 to i32
    %c0_i32_0 = arith.constant 0 : i32
    %2 = arith.cmpi ne, %1, %c0_i32_0 : i32
    scf.if %2 {
      %c0_188 = arith.constant 0 : index
      %c0_189 = arith.constant 0 : index
      %329 = vector.load %arg3[%c0_188, %c0_189] : memref<8x32xf32, #tpu.memory_space<vmem>>, vector<8x32xf32>
      %c0_190 = arith.constant 0 : index
      %c0_191 = arith.constant 0 : index
      %330 = vector.load %arg14[%c0_190, %c0_191] : memref<8x32xf32, #tpu.memory_space<vmem>>, vector<8x32xf32>
      tpu.vector_store %arg14[%c0_190, %c0_191], %329 {strides = array<i32>} : memref<8x32xf32, #tpu.memory_space<vmem>>, vector<8x32xf32>,
      %c0_192 = arith.constant 0 : index
      %c0_193 = arith.constant 0 : index
      %331 = vector.load %arg4[%c0_192, %c0_193] : memref<8x32xf32, #tpu.memory_space<vmem>>, vector<8x32xf32>
      %c0_194 = arith.constant 0 : index
      %c0_195 = arith.constant 0 : index
      %332 = vector.load %arg15[%c0_194, %c0_195] : memref<8x32xf32, #tpu.memory_space<vmem>>, vector<8x32xf32>
      tpu.vector_store %arg15[%c0_194, %c0_195], %331 {strides = array<i32>} : memref<8x32xf32, #tpu.memory_space<vmem>>, vector<8x32xf32>,
    } else {
    }
    %c0 = arith.constant 0 : index
    %c0_1 = arith.constant 0 : index
    %3 = vector.load %arg5[%c0, %c0_1] : memref<16x128xf32, #tpu.memory_space<vmem>>, vector<16x128xf32>
    %c0_2 = arith.constant 0 : index
    %c0_3 = arith.constant 0 : index
    %4 = vector.load %arg6[%c0_2, %c0_3] : memref<32x128xf32, #tpu.memory_space<vmem>>, vector<32x128xf32>
    %c0_4 = arith.constant 0 : index
    %c0_5 = arith.constant 0 : index
    %5 = vector.load %arg14[%c0_4, %c0_5] : memref<8x32xf32, #tpu.memory_space<vmem>>, vector<8x32xf32>
    %c0_6 = arith.constant 0 : index
    %c0_7 = arith.constant 0 : index
    %6 = vector.load %arg15[%c0_6, %c0_7] : memref<8x32xf32, #tpu.memory_space<vmem>>, vector<8x32xf32>
    %c0_8 = arith.constant 0 : index
    %c0_9 = arith.constant 0 : index
    %c0_10 = arith.constant 0 : index
    %7 = vector.load %arg2[%c0_8, %c0_9, %c0_10] : memref<8x8x16xf32, #tpu.memory_space<vmem>>, vector<1x8x16xf32>
    %8 = vector.shape_cast %7 : vector<1x8x16xf32> to vector<8x16xf32>
    %cst = arith.constant dense<0.000000e+00> : vector<8x128xf32>
    %9 = tpu.matmul %8, %3, %cst {dimension_numbers = #tpu.dot_dimension_numbers<[1], [0], [0], [1], [0, 0, 1, 1], [], []>} : vector<8x16xf32>, vector<16x128xf32>, vector<8x128xf32> -> vector<8x128xf32>
    %cst_11 = arith.constant dense<0.000000e+00> : vector<8x128xf32>
    %10 = tpu.matmul %5, %4, %cst_11 {dimension_numbers = #tpu.dot_dimension_numbers<[1], [0], [0], [1], [0, 0, 1, 1], [], []>} : vector<8x32xf32>, vector<32x128xf32>, vector<8x128xf32> -> vector<8x128xf32>
    %c0_12 = arith.constant 0 : index
    %c0_13 = arith.constant 0 : index
    %11 = vector.load %arg7[%c0_12, %c0_13] : memref<8x128xf32, #tpu.memory_space<vmem>>, vector<1x128xf32>
    %c0_14 = arith.constant 0 : index
    %c0_15 = arith.constant 0 : index
    %12 = vector.load %arg8[%c0_14, %c0_15] : memref<8x128xf32, #tpu.memory_space<vmem>>, vector<1x128xf32>
    %c0_16 = arith.constant 0 : index
    %c0_17 = arith.constant 0 : index
    %13 = vector.load %arg9[%c0_16, %c0_17] : memref<8x128xf32, #tpu.memory_space<vmem>>, vector<1x128xf32>
    %14 = vector.broadcast %11 : vector<1x128xf32> to vector<8x128xf32>
    %15 = arith.mulf %9, %14 : vector<8x128xf32>
    %16 = vector.broadcast %12 : vector<1x128xf32> to vector<8x128xf32>
    %17 = arith.mulf %10, %16 : vector<8x128xf32>
    %18 = arith.addf %15, %17 : vector<8x128xf32>
    %19 = vector.broadcast %13 : vector<1x128xf32> to vector<8x128xf32>
    %20 = arith.addf %18, %19 : vector<8x128xf32>
    %21 = math.tanh %20 : vector<8x128xf32>
    %cst_18 = arith.constant 5.000000e-01 : f32
    %22 = vector.broadcast %cst_18 : f32 to vector<8x128xf32>
    %23 = arith.mulf %22, %21 : vector<8x128xf32>
    %cst_19 = arith.constant 5.000000e-01 : f32
    %24 = vector.broadcast %cst_19 : f32 to vector<8x128xf32>
    %25 = arith.addf %23, %24 : vector<8x128xf32>
    %26 = vector.extract_strided_slice %25 {offsets = [0, 0], sizes = [8, 32], strides = [1, 1]} : vector<8x128xf32> to vector<8x32xf32>
    %27 = vector.extract_strided_slice %25 {offsets = [0, 32], sizes = [8, 32], strides = [1, 1]} : vector<8x128xf32> to vector<8x32xf32>
    %28 = vector.extract_strided_slice %25 {offsets = [0, 64], sizes = [8, 32], strides = [1, 1]} : vector<8x128xf32> to vector<8x32xf32>
    %29 = vector.extract_strided_slice %21 {offsets = [0, 96], sizes = [8, 32], strides = [1, 1]} : vector<8x128xf32> to vector<8x32xf32>
    %30 = arith.mulf %26, %6 : vector<8x32xf32>
    %31 = arith.mulf %27, %29 : vector<8x32xf32>
    %32 = arith.addf %30, %31 : vector<8x32xf32>
    %c0_20 = arith.constant 0 : index
    %c0_21 = arith.constant 0 : index
    %33 = vector.load %arg10[%c0_20, %c0_21] : memref<8x32xf32, #tpu.memory_space<vmem>>, vector<1x32xf32>
    %34 = vector.broadcast %33 : vector<1x32xf32> to vector<8x32xf32>
    %35 = arith.mulf %32, %34 : vector<8x32xf32>
    %c0_22 = arith.constant 0 : index
    %c0_23 = arith.constant 0 : index
    %36 = vector.load %arg11[%c0_22, %c0_23] : memref<8x32xf32, #tpu.memory_space<vmem>>, vector<1x32xf32>
    %37 = vector.broadcast %36 : vector<1x32xf32> to vector<8x32xf32>
    %38 = arith.addf %35, %37 : vector<8x32xf32>
    %39 = math.tanh %38 : vector<8x32xf32>
    %40 = arith.mulf %28, %39 : vector<8x32xf32>
    %c0_24 = arith.constant 0 : index
    %c0_25 = arith.constant 0 : index
    %c0_26 = arith.constant 0 : index
    %41 = vector.load %arg12[%c0_24, %c0_25, %c0_26] : memref<8x8x32xf32, #tpu.memory_space<vmem>>, vector<1x8x32xf32>
    %42 = vector.shape_cast %41 : vector<1x8x32xf32> to vector<8x32xf32>
    %43 = vector.shape_cast %40 : vector<8x32xf32> to vector<1x8x32xf32>
    tpu.vector_store %arg12[%c0_24, %c0_25, %c0_26], %43 {strides = array<i32>} : memref<8x8x32xf32, #tpu.memory_space<vmem>>, vector<1x8x32xf32>,
    %c0_27 = arith.constant 0 : index
    %c0_28 = arith.constant 0 : index
    %c0_29 = arith.constant 0 : index
    %44 = vector.load %arg13[%c0_27, %c0_28, %c0_29] : memref<8x8x32xf32, #tpu.memory_space<vmem>>, vector<1x8x32xf32>
    %45 = vector.shape_cast %44 : vector<1x8x32xf32> to vector<8x32xf32>
    %46 = vector.shape_cast %32 : vector<8x32xf32> to vector<1x8x32xf32>
    tpu.vector_store %arg13[%c0_27, %c0_28, %c0_29], %46 {strides = array<i32>} : memref<8x8x32xf32, #tpu.memory_space<vmem>>, vector<1x8x32xf32>,
    %c1 = arith.constant 1 : index
    %c0_30 = arith.constant 0 : index
    %c0_31 = arith.constant 0 : index
    %47 = vector.load %arg2[%c1, %c0_30, %c0_31] : memref<8x8x16xf32, #tpu.memory_space<vmem>>, vector<1x8x16xf32>
    %48 = vector.shape_cast %47 : vector<1x8x16xf32> to vector<8x16xf32>
    %cst_32 = arith.constant dense<0.000000e+00> : vector<8x128xf32>
    %49 = tpu.matmul %48, %3, %cst_32 {dimension_numbers = #tpu.dot_dimension_numbers<[1], [0], [0], [1], [0, 0, 1, 1], [], []>} : vector<8x16xf32>, vector<16x128xf32>, vector<8x128xf32> -> vector<8x128xf32>
    %cst_33 = arith.constant dense<0.000000e+00> : vector<8x128xf32>
    %50 = tpu.matmul %40, %4, %cst_33 {dimension_numbers = #tpu.dot_dimension_numbers<[1], [0], [0], [1], [0, 0, 1, 1], [], []>} : vector<8x32xf32>, vector<32x128xf32>, vector<8x128xf32> -> vector<8x128xf32>
    %c1_34 = arith.constant 1 : index
    %c0_35 = arith.constant 0 : index
    %51 = vector.load %arg7[%c1_34, %c0_35] : memref<8x128xf32, #tpu.memory_space<vmem>>, vector<1x128xf32>
    %c1_36 = arith.constant 1 : index
    %c0_37 = arith.constant 0 : index
    %52 = vector.load %arg8[%c1_36, %c0_37] : memref<8x128xf32, #tpu.memory_space<vmem>>, vector<1x128xf32>
    %c1_38 = arith.constant 1 : index
    %c0_39 = arith.constant 0 : index
    %53 = vector.load %arg9[%c1_38, %c0_39] : memref<8x128xf32, #tpu.memory_space<vmem>>, vector<1x128xf32>
    %54 = vector.broadcast %51 : vector<1x128xf32> to vector<8x128xf32>
    %55 = arith.mulf %49, %54 : vector<8x128xf32>
    %56 = vector.broadcast %52 : vector<1x128xf32> to vector<8x128xf32>
    %57 = arith.mulf %50, %56 : vector<8x128xf32>
    %58 = arith.addf %55, %57 : vector<8x128xf32>
    %59 = vector.broadcast %53 : vector<1x128xf32> to vector<8x128xf32>
    %60 = arith.addf %58, %59 : vector<8x128xf32>
    %61 = math.tanh %60 : vector<8x128xf32>
    %cst_40 = arith.constant 5.000000e-01 : f32
    %62 = vector.broadcast %cst_40 : f32 to vector<8x128xf32>
    %63 = arith.mulf %62, %61 : vector<8x128xf32>
    %cst_41 = arith.constant 5.000000e-01 : f32
    %64 = vector.broadcast %cst_41 : f32 to vector<8x128xf32>
    %65 = arith.addf %63, %64 : vector<8x128xf32>
    %66 = vector.extract_strided_slice %65 {offsets = [0, 0], sizes = [8, 32], strides = [1, 1]} : vector<8x128xf32> to vector<8x32xf32>
    %67 = vector.extract_strided_slice %65 {offsets = [0, 32], sizes = [8, 32], strides = [1, 1]} : vector<8x128xf32> to vector<8x32xf32>
    %68 = vector.extract_strided_slice %65 {offsets = [0, 64], sizes = [8, 32], strides = [1, 1]} : vector<8x128xf32> to vector<8x32xf32>
    %69 = vector.extract_strided_slice %61 {offsets = [0, 96], sizes = [8, 32], strides = [1, 1]} : vector<8x128xf32> to vector<8x32xf32>
    %70 = arith.mulf %66, %32 : vector<8x32xf32>
    %71 = arith.mulf %67, %69 : vector<8x32xf32>
    %72 = arith.addf %70, %71 : vector<8x32xf32>
    %c1_42 = arith.constant 1 : index
    %c0_43 = arith.constant 0 : index
    %73 = vector.load %arg10[%c1_42, %c0_43] : memref<8x32xf32, #tpu.memory_space<vmem>>, vector<1x32xf32>
    %74 = vector.broadcast %73 : vector<1x32xf32> to vector<8x32xf32>
    %75 = arith.mulf %72, %74 : vector<8x32xf32>
    %c1_44 = arith.constant 1 : index
    %c0_45 = arith.constant 0 : index
    %76 = vector.load %arg11[%c1_44, %c0_45] : memref<8x32xf32, #tpu.memory_space<vmem>>, vector<1x32xf32>
    %77 = vector.broadcast %76 : vector<1x32xf32> to vector<8x32xf32>
    %78 = arith.addf %75, %77 : vector<8x32xf32>
    %79 = math.tanh %78 : vector<8x32xf32>
    %80 = arith.mulf %68, %79 : vector<8x32xf32>
    %c1_46 = arith.constant 1 : index
    %c0_47 = arith.constant 0 : index
    %c0_48 = arith.constant 0 : index
    %81 = vector.load %arg12[%c1_46, %c0_47, %c0_48] : memref<8x8x32xf32, #tpu.memory_space<vmem>>, vector<1x8x32xf32>
    %82 = vector.shape_cast %81 : vector<1x8x32xf32> to vector<8x32xf32>
    %83 = vector.shape_cast %80 : vector<8x32xf32> to vector<1x8x32xf32>
    tpu.vector_store %arg12[%c1_46, %c0_47, %c0_48], %83 {strides = array<i32>} : memref<8x8x32xf32, #tpu.memory_space<vmem>>, vector<1x8x32xf32>,
    %c1_49 = arith.constant 1 : index
    %c0_50 = arith.constant 0 : index
    %c0_51 = arith.constant 0 : index
    %84 = vector.load %arg13[%c1_49, %c0_50, %c0_51] : memref<8x8x32xf32, #tpu.memory_space<vmem>>, vector<1x8x32xf32>
    %85 = vector.shape_cast %84 : vector<1x8x32xf32> to vector<8x32xf32>
    %86 = vector.shape_cast %72 : vector<8x32xf32> to vector<1x8x32xf32>
    tpu.vector_store %arg13[%c1_49, %c0_50, %c0_51], %86 {strides = array<i32>} : memref<8x8x32xf32, #tpu.memory_space<vmem>>, vector<1x8x32xf32>,
    %c2 = arith.constant 2 : index
    %c0_52 = arith.constant 0 : index
    %c0_53 = arith.constant 0 : index
    %87 = vector.load %arg2[%c2, %c0_52, %c0_53] : memref<8x8x16xf32, #tpu.memory_space<vmem>>, vector<1x8x16xf32>
    %88 = vector.shape_cast %87 : vector<1x8x16xf32> to vector<8x16xf32>
    %cst_54 = arith.constant dense<0.000000e+00> : vector<8x128xf32>
    %89 = tpu.matmul %88, %3, %cst_54 {dimension_numbers = #tpu.dot_dimension_numbers<[1], [0], [0], [1], [0, 0, 1, 1], [], []>} : vector<8x16xf32>, vector<16x128xf32>, vector<8x128xf32> -> vector<8x128xf32>
    %cst_55 = arith.constant dense<0.000000e+00> : vector<8x128xf32>
    %90 = tpu.matmul %80, %4, %cst_55 {dimension_numbers = #tpu.dot_dimension_numbers<[1], [0], [0], [1], [0, 0, 1, 1], [], []>} : vector<8x32xf32>, vector<32x128xf32>, vector<8x128xf32> -> vector<8x128xf32>
    %c2_56 = arith.constant 2 : index
    %c0_57 = arith.constant 0 : index
    %91 = vector.load %arg7[%c2_56, %c0_57] : memref<8x128xf32, #tpu.memory_space<vmem>>, vector<1x128xf32>
    %c2_58 = arith.constant 2 : index
    %c0_59 = arith.constant 0 : index
    %92 = vector.load %arg8[%c2_58, %c0_59] : memref<8x128xf32, #tpu.memory_space<vmem>>, vector<1x128xf32>
    %c2_60 = arith.constant 2 : index
    %c0_61 = arith.constant 0 : index
    %93 = vector.load %arg9[%c2_60, %c0_61] : memref<8x128xf32, #tpu.memory_space<vmem>>, vector<1x128xf32>
    %94 = vector.broadcast %91 : vector<1x128xf32> to vector<8x128xf32>
    %95 = arith.mulf %89, %94 : vector<8x128xf32>
    %96 = vector.broadcast %92 : vector<1x128xf32> to vector<8x128xf32>
    %97 = arith.mulf %90, %96 : vector<8x128xf32>
    %98 = arith.addf %95, %97 : vector<8x128xf32>
    %99 = vector.broadcast %93 : vector<1x128xf32> to vector<8x128xf32>
    %100 = arith.addf %98, %99 : vector<8x128xf32>
    %101 = math.tanh %100 : vector<8x128xf32>
    %cst_62 = arith.constant 5.000000e-01 : f32
    %102 = vector.broadcast %cst_62 : f32 to vector<8x128xf32>
    %103 = arith.mulf %102, %101 : vector<8x128xf32>
    %cst_63 = arith.constant 5.000000e-01 : f32
    %104 = vector.broadcast %cst_63 : f32 to vector<8x128xf32>
    %105 = arith.addf %103, %104 : vector<8x128xf32>
    %106 = vector.extract_strided_slice %105 {offsets = [0, 0], sizes = [8, 32], strides = [1, 1]} : vector<8x128xf32> to vector<8x32xf32>
    %107 = vector.extract_strided_slice %105 {offsets = [0, 32], sizes = [8, 32], strides = [1, 1]} : vector<8x128xf32> to vector<8x32xf32>
    %108 = vector.extract_strided_slice %105 {offsets = [0, 64], sizes = [8, 32], strides = [1, 1]} : vector<8x128xf32> to vector<8x32xf32>
    %109 = vector.extract_strided_slice %101 {offsets = [0, 96], sizes = [8, 32], strides = [1, 1]} : vector<8x128xf32> to vector<8x32xf32>
    %110 = arith.mulf %106, %72 : vector<8x32xf32>
    %111 = arith.mulf %107, %109 : vector<8x32xf32>
    %112 = arith.addf %110, %111 : vector<8x32xf32>
    %c2_64 = arith.constant 2 : index
    %c0_65 = arith.constant 0 : index
    %113 = vector.load %arg10[%c2_64, %c0_65] : memref<8x32xf32, #tpu.memory_space<vmem>>, vector<1x32xf32>
    %114 = vector.broadcast %113 : vector<1x32xf32> to vector<8x32xf32>
    %115 = arith.mulf %112, %114 : vector<8x32xf32>
    %c2_66 = arith.constant 2 : index
    %c0_67 = arith.constant 0 : index
    %116 = vector.load %arg11[%c2_66, %c0_67] : memref<8x32xf32, #tpu.memory_space<vmem>>, vector<1x32xf32>
    %117 = vector.broadcast %116 : vector<1x32xf32> to vector<8x32xf32>
    %118 = arith.addf %115, %117 : vector<8x32xf32>
    %119 = math.tanh %118 : vector<8x32xf32>
    %120 = arith.mulf %108, %119 : vector<8x32xf32>
    %c2_68 = arith.constant 2 : index
    %c0_69 = arith.constant 0 : index
    %c0_70 = arith.constant 0 : index
    %121 = vector.load %arg12[%c2_68, %c0_69, %c0_70] : memref<8x8x32xf32, #tpu.memory_space<vmem>>, vector<1x8x32xf32>
    %122 = vector.shape_cast %121 : vector<1x8x32xf32> to vector<8x32xf32>
    %123 = vector.shape_cast %120 : vector<8x32xf32> to vector<1x8x32xf32>
    tpu.vector_store %arg12[%c2_68, %c0_69, %c0_70], %123 {strides = array<i32>} : memref<8x8x32xf32, #tpu.memory_space<vmem>>, vector<1x8x32xf32>,
    %c2_71 = arith.constant 2 : index
    %c0_72 = arith.constant 0 : index
    %c0_73 = arith.constant 0 : index
    %124 = vector.load %arg13[%c2_71, %c0_72, %c0_73] : memref<8x8x32xf32, #tpu.memory_space<vmem>>, vector<1x8x32xf32>
    %125 = vector.shape_cast %124 : vector<1x8x32xf32> to vector<8x32xf32>
    %126 = vector.shape_cast %112 : vector<8x32xf32> to vector<1x8x32xf32>
    tpu.vector_store %arg13[%c2_71, %c0_72, %c0_73], %126 {strides = array<i32>} : memref<8x8x32xf32, #tpu.memory_space<vmem>>, vector<1x8x32xf32>,
    %c3 = arith.constant 3 : index
    %c0_74 = arith.constant 0 : index
    %c0_75 = arith.constant 0 : index
    %127 = vector.load %arg2[%c3, %c0_74, %c0_75] : memref<8x8x16xf32, #tpu.memory_space<vmem>>, vector<1x8x16xf32>
    %128 = vector.shape_cast %127 : vector<1x8x16xf32> to vector<8x16xf32>
    %cst_76 = arith.constant dense<0.000000e+00> : vector<8x128xf32>
    %129 = tpu.matmul %128, %3, %cst_76 {dimension_numbers = #tpu.dot_dimension_numbers<[1], [0], [0], [1], [0, 0, 1, 1], [], []>} : vector<8x16xf32>, vector<16x128xf32>, vector<8x128xf32> -> vector<8x128xf32>
    %cst_77 = arith.constant dense<0.000000e+00> : vector<8x128xf32>
    %130 = tpu.matmul %120, %4, %cst_77 {dimension_numbers = #tpu.dot_dimension_numbers<[1], [0], [0], [1], [0, 0, 1, 1], [], []>} : vector<8x32xf32>, vector<32x128xf32>, vector<8x128xf32> -> vector<8x128xf32>
    %c3_78 = arith.constant 3 : index
    %c0_79 = arith.constant 0 : index
    %131 = vector.load %arg7[%c3_78, %c0_79] : memref<8x128xf32, #tpu.memory_space<vmem>>, vector<1x128xf32>
    %c3_80 = arith.constant 3 : index
    %c0_81 = arith.constant 0 : index
    %132 = vector.load %arg8[%c3_80, %c0_81] : memref<8x128xf32, #tpu.memory_space<vmem>>, vector<1x128xf32>
    %c3_82 = arith.constant 3 : index
    %c0_83 = arith.constant 0 : index
    %133 = vector.load %arg9[%c3_82, %c0_83] : memref<8x128xf32, #tpu.memory_space<vmem>>, vector<1x128xf32>
    %134 = vector.broadcast %131 : vector<1x128xf32> to vector<8x128xf32>
    %135 = arith.mulf %129, %134 : vector<8x128xf32>
    %136 = vector.broadcast %132 : vector<1x128xf32> to vector<8x128xf32>
    %137 = arith.mulf %130, %136 : vector<8x128xf32>
    %138 = arith.addf %135, %137 : vector<8x128xf32>
    %139 = vector.broadcast %133 : vector<1x128xf32> to vector<8x128xf32>
    %140 = arith.addf %138, %139 : vector<8x128xf32>
    %141 = math.tanh %140 : vector<8x128xf32>
    %cst_84 = arith.constant 5.000000e-01 : f32
    %142 = vector.broadcast %cst_84 : f32 to vector<8x128xf32>
    %143 = arith.mulf %142, %141 : vector<8x128xf32>
    %cst_85 = arith.constant 5.000000e-01 : f32
    %144 = vector.broadcast %cst_85 : f32 to vector<8x128xf32>
    %145 = arith.addf %143, %144 : vector<8x128xf32>
    %146 = vector.extract_strided_slice %145 {offsets = [0, 0], sizes = [8, 32], strides = [1, 1]} : vector<8x128xf32> to vector<8x32xf32>
    %147 = vector.extract_strided_slice %145 {offsets = [0, 32], sizes = [8, 32], strides = [1, 1]} : vector<8x128xf32> to vector<8x32xf32>
    %148 = vector.extract_strided_slice %145 {offsets = [0, 64], sizes = [8, 32], strides = [1, 1]} : vector<8x128xf32> to vector<8x32xf32>
    %149 = vector.extract_strided_slice %141 {offsets = [0, 96], sizes = [8, 32], strides = [1, 1]} : vector<8x128xf32> to vector<8x32xf32>
    %150 = arith.mulf %146, %112 : vector<8x32xf32>
    %151 = arith.mulf %147, %149 : vector<8x32xf32>
    %152 = arith.addf %150, %151 : vector<8x32xf32>
    %c3_86 = arith.constant 3 : index
    %c0_87 = arith.constant 0 : index
    %153 = vector.load %arg10[%c3_86, %c0_87] : memref<8x32xf32, #tpu.memory_space<vmem>>, vector<1x32xf32>
    %154 = vector.broadcast %153 : vector<1x32xf32> to vector<8x32xf32>
    %155 = arith.mulf %152, %154 : vector<8x32xf32>
    %c3_88 = arith.constant 3 : index
    %c0_89 = arith.constant 0 : index
    %156 = vector.load %arg11[%c3_88, %c0_89] : memref<8x32xf32, #tpu.memory_space<vmem>>, vector<1x32xf32>
    %157 = vector.broadcast %156 : vector<1x32xf32> to vector<8x32xf32>
    %158 = arith.addf %155, %157 : vector<8x32xf32>
    %159 = math.tanh %158 : vector<8x32xf32>
    %160 = arith.mulf %148, %159 : vector<8x32xf32>
    %c3_90 = arith.constant 3 : index
    %c0_91 = arith.constant 0 : index
    %c0_92 = arith.constant 0 : index
    %161 = vector.load %arg12[%c3_90, %c0_91, %c0_92] : memref<8x8x32xf32, #tpu.memory_space<vmem>>, vector<1x8x32xf32>
    %162 = vector.shape_cast %161 : vector<1x8x32xf32> to vector<8x32xf32>
    %163 = vector.shape_cast %160 : vector<8x32xf32> to vector<1x8x32xf32>
    tpu.vector_store %arg12[%c3_90, %c0_91, %c0_92], %163 {strides = array<i32>} : memref<8x8x32xf32, #tpu.memory_space<vmem>>, vector<1x8x32xf32>,
    %c3_93 = arith.constant 3 : index
    %c0_94 = arith.constant 0 : index
    %c0_95 = arith.constant 0 : index
    %164 = vector.load %arg13[%c3_93, %c0_94, %c0_95] : memref<8x8x32xf32, #tpu.memory_space<vmem>>, vector<1x8x32xf32>
    %165 = vector.shape_cast %164 : vector<1x8x32xf32> to vector<8x32xf32>
    %166 = vector.shape_cast %152 : vector<8x32xf32> to vector<1x8x32xf32>
    tpu.vector_store %arg13[%c3_93, %c0_94, %c0_95], %166 {strides = array<i32>} : memref<8x8x32xf32, #tpu.memory_space<vmem>>, vector<1x8x32xf32>,
    %c4 = arith.constant 4 : index
    %c0_96 = arith.constant 0 : index
    %c0_97 = arith.constant 0 : index
    %167 = vector.load %arg2[%c4, %c0_96, %c0_97] : memref<8x8x16xf32, #tpu.memory_space<vmem>>, vector<1x8x16xf32>
    %168 = vector.shape_cast %167 : vector<1x8x16xf32> to vector<8x16xf32>
    %cst_98 = arith.constant dense<0.000000e+00> : vector<8x128xf32>
    %169 = tpu.matmul %168, %3, %cst_98 {dimension_numbers = #tpu.dot_dimension_numbers<[1], [0], [0], [1], [0, 0, 1, 1], [], []>} : vector<8x16xf32>, vector<16x128xf32>, vector<8x128xf32> -> vector<8x128xf32>
    %cst_99 = arith.constant dense<0.000000e+00> : vector<8x128xf32>
    %170 = tpu.matmul %160, %4, %cst_99 {dimension_numbers = #tpu.dot_dimension_numbers<[1], [0], [0], [1], [0, 0, 1, 1], [], []>} : vector<8x32xf32>, vector<32x128xf32>, vector<8x128xf32> -> vector<8x128xf32>
    %c4_100 = arith.constant 4 : index
    %c0_101 = arith.constant 0 : index
    %171 = vector.load %arg7[%c4_100, %c0_101] : memref<8x128xf32, #tpu.memory_space<vmem>>, vector<1x128xf32>
    %c4_102 = arith.constant 4 : index
    %c0_103 = arith.constant 0 : index
    %172 = vector.load %arg8[%c4_102, %c0_103] : memref<8x128xf32, #tpu.memory_space<vmem>>, vector<1x128xf32>
    %c4_104 = arith.constant 4 : index
    %c0_105 = arith.constant 0 : index
    %173 = vector.load %arg9[%c4_104, %c0_105] : memref<8x128xf32, #tpu.memory_space<vmem>>, vector<1x128xf32>
    %174 = vector.broadcast %171 : vector<1x128xf32> to vector<8x128xf32>
    %175 = arith.mulf %169, %174 : vector<8x128xf32>
    %176 = vector.broadcast %172 : vector<1x128xf32> to vector<8x128xf32>
    %177 = arith.mulf %170, %176 : vector<8x128xf32>
    %178 = arith.addf %175, %177 : vector<8x128xf32>
    %179 = vector.broadcast %173 : vector<1x128xf32> to vector<8x128xf32>
    %180 = arith.addf %178, %179 : vector<8x128xf32>
    %181 = math.tanh %180 : vector<8x128xf32>
    %cst_106 = arith.constant 5.000000e-01 : f32
    %182 = vector.broadcast %cst_106 : f32 to vector<8x128xf32>
    %183 = arith.mulf %182, %181 : vector<8x128xf32>
    %cst_107 = arith.constant 5.000000e-01 : f32
    %184 = vector.broadcast %cst_107 : f32 to vector<8x128xf32>
    %185 = arith.addf %183, %184 : vector<8x128xf32>
    %186 = vector.extract_strided_slice %185 {offsets = [0, 0], sizes = [8, 32], strides = [1, 1]} : vector<8x128xf32> to vector<8x32xf32>
    %187 = vector.extract_strided_slice %185 {offsets = [0, 32], sizes = [8, 32], strides = [1, 1]} : vector<8x128xf32> to vector<8x32xf32>
    %188 = vector.extract_strided_slice %185 {offsets = [0, 64], sizes = [8, 32], strides = [1, 1]} : vector<8x128xf32> to vector<8x32xf32>
    %189 = vector.extract_strided_slice %181 {offsets = [0, 96], sizes = [8, 32], strides = [1, 1]} : vector<8x128xf32> to vector<8x32xf32>
    %190 = arith.mulf %186, %152 : vector<8x32xf32>
    %191 = arith.mulf %187, %189 : vector<8x32xf32>
    %192 = arith.addf %190, %191 : vector<8x32xf32>
    %c4_108 = arith.constant 4 : index
    %c0_109 = arith.constant 0 : index
    %193 = vector.load %arg10[%c4_108, %c0_109] : memref<8x32xf32, #tpu.memory_space<vmem>>, vector<1x32xf32>
    %194 = vector.broadcast %193 : vector<1x32xf32> to vector<8x32xf32>
    %195 = arith.mulf %192, %194 : vector<8x32xf32>
    %c4_110 = arith.constant 4 : index
    %c0_111 = arith.constant 0 : index
    %196 = vector.load %arg11[%c4_110, %c0_111] : memref<8x32xf32, #tpu.memory_space<vmem>>, vector<1x32xf32>
    %197 = vector.broadcast %196 : vector<1x32xf32> to vector<8x32xf32>
    %198 = arith.addf %195, %197 : vector<8x32xf32>
    %199 = math.tanh %198 : vector<8x32xf32>
    %200 = arith.mulf %188, %199 : vector<8x32xf32>
    %c4_112 = arith.constant 4 : index
    %c0_113 = arith.constant 0 : index
    %c0_114 = arith.constant 0 : index
    %201 = vector.load %arg12[%c4_112, %c0_113, %c0_114] : memref<8x8x32xf32, #tpu.memory_space<vmem>>, vector<1x8x32xf32>
    %202 = vector.shape_cast %201 : vector<1x8x32xf32> to vector<8x32xf32>
    %203 = vector.shape_cast %200 : vector<8x32xf32> to vector<1x8x32xf32>
    tpu.vector_store %arg12[%c4_112, %c0_113, %c0_114], %203 {strides = array<i32>} : memref<8x8x32xf32, #tpu.memory_space<vmem>>, vector<1x8x32xf32>,
    %c4_115 = arith.constant 4 : index
    %c0_116 = arith.constant 0 : index
    %c0_117 = arith.constant 0 : index
    %204 = vector.load %arg13[%c4_115, %c0_116, %c0_117] : memref<8x8x32xf32, #tpu.memory_space<vmem>>, vector<1x8x32xf32>
    %205 = vector.shape_cast %204 : vector<1x8x32xf32> to vector<8x32xf32>
    %206 = vector.shape_cast %192 : vector<8x32xf32> to vector<1x8x32xf32>
    tpu.vector_store %arg13[%c4_115, %c0_116, %c0_117], %206 {strides = array<i32>} : memref<8x8x32xf32, #tpu.memory_space<vmem>>, vector<1x8x32xf32>,
    %c5 = arith.constant 5 : index
    %c0_118 = arith.constant 0 : index
    %c0_119 = arith.constant 0 : index
    %207 = vector.load %arg2[%c5, %c0_118, %c0_119] : memref<8x8x16xf32, #tpu.memory_space<vmem>>, vector<1x8x16xf32>
    %208 = vector.shape_cast %207 : vector<1x8x16xf32> to vector<8x16xf32>
    %cst_120 = arith.constant dense<0.000000e+00> : vector<8x128xf32>
    %209 = tpu.matmul %208, %3, %cst_120 {dimension_numbers = #tpu.dot_dimension_numbers<[1], [0], [0], [1], [0, 0, 1, 1], [], []>} : vector<8x16xf32>, vector<16x128xf32>, vector<8x128xf32> -> vector<8x128xf32>
    %cst_121 = arith.constant dense<0.000000e+00> : vector<8x128xf32>
    %210 = tpu.matmul %200, %4, %cst_121 {dimension_numbers = #tpu.dot_dimension_numbers<[1], [0], [0], [1], [0, 0, 1, 1], [], []>} : vector<8x32xf32>, vector<32x128xf32>, vector<8x128xf32> -> vector<8x128xf32>
    %c5_122 = arith.constant 5 : index
    %c0_123 = arith.constant 0 : index
    %211 = vector.load %arg7[%c5_122, %c0_123] : memref<8x128xf32, #tpu.memory_space<vmem>>, vector<1x128xf32>
    %c5_124 = arith.constant 5 : index
    %c0_125 = arith.constant 0 : index
    %212 = vector.load %arg8[%c5_124, %c0_125] : memref<8x128xf32, #tpu.memory_space<vmem>>, vector<1x128xf32>
    %c5_126 = arith.constant 5 : index
    %c0_127 = arith.constant 0 : index
    %213 = vector.load %arg9[%c5_126, %c0_127] : memref<8x128xf32, #tpu.memory_space<vmem>>, vector<1x128xf32>
    %214 = vector.broadcast %211 : vector<1x128xf32> to vector<8x128xf32>
    %215 = arith.mulf %209, %214 : vector<8x128xf32>
    %216 = vector.broadcast %212 : vector<1x128xf32> to vector<8x128xf32>
    %217 = arith.mulf %210, %216 : vector<8x128xf32>
    %218 = arith.addf %215, %217 : vector<8x128xf32>
    %219 = vector.broadcast %213 : vector<1x128xf32> to vector<8x128xf32>
    %220 = arith.addf %218, %219 : vector<8x128xf32>
    %221 = math.tanh %220 : vector<8x128xf32>
    %cst_128 = arith.constant 5.000000e-01 : f32
    %222 = vector.broadcast %cst_128 : f32 to vector<8x128xf32>
    %223 = arith.mulf %222, %221 : vector<8x128xf32>
    %cst_129 = arith.constant 5.000000e-01 : f32
    %224 = vector.broadcast %cst_129 : f32 to vector<8x128xf32>
    %225 = arith.addf %223, %224 : vector<8x128xf32>
    %226 = vector.extract_strided_slice %225 {offsets = [0, 0], sizes = [8, 32], strides = [1, 1]} : vector<8x128xf32> to vector<8x32xf32>
    %227 = vector.extract_strided_slice %225 {offsets = [0, 32], sizes = [8, 32], strides = [1, 1]} : vector<8x128xf32> to vector<8x32xf32>
    %228 = vector.extract_strided_slice %225 {offsets = [0, 64], sizes = [8, 32], strides = [1, 1]} : vector<8x128xf32> to vector<8x32xf32>
    %229 = vector.extract_strided_slice %221 {offsets = [0, 96], sizes = [8, 32], strides = [1, 1]} : vector<8x128xf32> to vector<8x32xf32>
    %230 = arith.mulf %226, %192 : vector<8x32xf32>
    %231 = arith.mulf %227, %229 : vector<8x32xf32>
    %232 = arith.addf %230, %231 : vector<8x32xf32>
    %c5_130 = arith.constant 5 : index
    %c0_131 = arith.constant 0 : index
    %233 = vector.load %arg10[%c5_130, %c0_131] : memref<8x32xf32, #tpu.memory_space<vmem>>, vector<1x32xf32>
    %234 = vector.broadcast %233 : vector<1x32xf32> to vector<8x32xf32>
    %235 = arith.mulf %232, %234 : vector<8x32xf32>
    %c5_132 = arith.constant 5 : index
    %c0_133 = arith.constant 0 : index
    %236 = vector.load %arg11[%c5_132, %c0_133] : memref<8x32xf32, #tpu.memory_space<vmem>>, vector<1x32xf32>
    %237 = vector.broadcast %236 : vector<1x32xf32> to vector<8x32xf32>
    %238 = arith.addf %235, %237 : vector<8x32xf32>
    %239 = math.tanh %238 : vector<8x32xf32>
    %240 = arith.mulf %228, %239 : vector<8x32xf32>
    %c5_134 = arith.constant 5 : index
    %c0_135 = arith.constant 0 : index
    %c0_136 = arith.constant 0 : index
    %241 = vector.load %arg12[%c5_134, %c0_135, %c0_136] : memref<8x8x32xf32, #tpu.memory_space<vmem>>, vector<1x8x32xf32>
    %242 = vector.shape_cast %241 : vector<1x8x32xf32> to vector<8x32xf32>
    %243 = vector.shape_cast %240 : vector<8x32xf32> to vector<1x8x32xf32>
    tpu.vector_store %arg12[%c5_134, %c0_135, %c0_136], %243 {strides = array<i32>} : memref<8x8x32xf32, #tpu.memory_space<vmem>>, vector<1x8x32xf32>,
    %c5_137 = arith.constant 5 : index
    %c0_138 = arith.constant 0 : index
    %c0_139 = arith.constant 0 : index
    %244 = vector.load %arg13[%c5_137, %c0_138, %c0_139] : memref<8x8x32xf32, #tpu.memory_space<vmem>>, vector<1x8x32xf32>
    %245 = vector.shape_cast %244 : vector<1x8x32xf32> to vector<8x32xf32>
    %246 = vector.shape_cast %232 : vector<8x32xf32> to vector<1x8x32xf32>
    tpu.vector_store %arg13[%c5_137, %c0_138, %c0_139], %246 {strides = array<i32>} : memref<8x8x32xf32, #tpu.memory_space<vmem>>, vector<1x8x32xf32>,
    %c6 = arith.constant 6 : index
    %c0_140 = arith.constant 0 : index
    %c0_141 = arith.constant 0 : index
    %247 = vector.load %arg2[%c6, %c0_140, %c0_141] : memref<8x8x16xf32, #tpu.memory_space<vmem>>, vector<1x8x16xf32>
    %248 = vector.shape_cast %247 : vector<1x8x16xf32> to vector<8x16xf32>
    %cst_142 = arith.constant dense<0.000000e+00> : vector<8x128xf32>
    %249 = tpu.matmul %248, %3, %cst_142 {dimension_numbers = #tpu.dot_dimension_numbers<[1], [0], [0], [1], [0, 0, 1, 1], [], []>} : vector<8x16xf32>, vector<16x128xf32>, vector<8x128xf32> -> vector<8x128xf32>
    %cst_143 = arith.constant dense<0.000000e+00> : vector<8x128xf32>
    %250 = tpu.matmul %240, %4, %cst_143 {dimension_numbers = #tpu.dot_dimension_numbers<[1], [0], [0], [1], [0, 0, 1, 1], [], []>} : vector<8x32xf32>, vector<32x128xf32>, vector<8x128xf32> -> vector<8x128xf32>
    %c6_144 = arith.constant 6 : index
    %c0_145 = arith.constant 0 : index
    %251 = vector.load %arg7[%c6_144, %c0_145] : memref<8x128xf32, #tpu.memory_space<vmem>>, vector<1x128xf32>
    %c6_146 = arith.constant 6 : index
    %c0_147 = arith.constant 0 : index
    %252 = vector.load %arg8[%c6_146, %c0_147] : memref<8x128xf32, #tpu.memory_space<vmem>>, vector<1x128xf32>
    %c6_148 = arith.constant 6 : index
    %c0_149 = arith.constant 0 : index
    %253 = vector.load %arg9[%c6_148, %c0_149] : memref<8x128xf32, #tpu.memory_space<vmem>>, vector<1x128xf32>
    %254 = vector.broadcast %251 : vector<1x128xf32> to vector<8x128xf32>
    %255 = arith.mulf %249, %254 : vector<8x128xf32>
    %256 = vector.broadcast %252 : vector<1x128xf32> to vector<8x128xf32>
    %257 = arith.mulf %250, %256 : vector<8x128xf32>
    %258 = arith.addf %255, %257 : vector<8x128xf32>
    %259 = vector.broadcast %253 : vector<1x128xf32> to vector<8x128xf32>
    %260 = arith.addf %258, %259 : vector<8x128xf32>
    %261 = math.tanh %260 : vector<8x128xf32>
    %cst_150 = arith.constant 5.000000e-01 : f32
    %262 = vector.broadcast %cst_150 : f32 to vector<8x128xf32>
    %263 = arith.mulf %262, %261 : vector<8x128xf32>
    %cst_151 = arith.constant 5.000000e-01 : f32
    %264 = vector.broadcast %cst_151 : f32 to vector<8x128xf32>
    %265 = arith.addf %263, %264 : vector<8x128xf32>
    %266 = vector.extract_strided_slice %265 {offsets = [0, 0], sizes = [8, 32], strides = [1, 1]} : vector<8x128xf32> to vector<8x32xf32>
    %267 = vector.extract_strided_slice %265 {offsets = [0, 32], sizes = [8, 32], strides = [1, 1]} : vector<8x128xf32> to vector<8x32xf32>
    %268 = vector.extract_strided_slice %265 {offsets = [0, 64], sizes = [8, 32], strides = [1, 1]} : vector<8x128xf32> to vector<8x32xf32>
    %269 = vector.extract_strided_slice %261 {offsets = [0, 96], sizes = [8, 32], strides = [1, 1]} : vector<8x128xf32> to vector<8x32xf32>
    %270 = arith.mulf %266, %232 : vector<8x32xf32>
    %271 = arith.mulf %267, %269 : vector<8x32xf32>
    %272 = arith.addf %270, %271 : vector<8x32xf32>
    %c6_152 = arith.constant 6 : index
    %c0_153 = arith.constant 0 : index
    %273 = vector.load %arg10[%c6_152, %c0_153] : memref<8x32xf32, #tpu.memory_space<vmem>>, vector<1x32xf32>
    %274 = vector.broadcast %273 : vector<1x32xf32> to vector<8x32xf32>
    %275 = arith.mulf %272, %274 : vector<8x32xf32>
    %c6_154 = arith.constant 6 : index
    %c0_155 = arith.constant 0 : index
    %276 = vector.load %arg11[%c6_154, %c0_155] : memref<8x32xf32, #tpu.memory_space<vmem>>, vector<1x32xf32>
    %277 = vector.broadcast %276 : vector<1x32xf32> to vector<8x32xf32>
    %278 = arith.addf %275, %277 : vector<8x32xf32>
    %279 = math.tanh %278 : vector<8x32xf32>
    %280 = arith.mulf %268, %279 : vector<8x32xf32>
    %c6_156 = arith.constant 6 : index
    %c0_157 = arith.constant 0 : index
    %c0_158 = arith.constant 0 : index
    %281 = vector.load %arg12[%c6_156, %c0_157, %c0_158] : memref<8x8x32xf32, #tpu.memory_space<vmem>>, vector<1x8x32xf32>
    %282 = vector.shape_cast %281 : vector<1x8x32xf32> to vector<8x32xf32>
    %283 = vector.shape_cast %280 : vector<8x32xf32> to vector<1x8x32xf32>
    tpu.vector_store %arg12[%c6_156, %c0_157, %c0_158], %283 {strides = array<i32>} : memref<8x8x32xf32, #tpu.memory_space<vmem>>, vector<1x8x32xf32>,
    %c6_159 = arith.constant 6 : index
    %c0_160 = arith.constant 0 : index
    %c0_161 = arith.constant 0 : index
    %284 = vector.load %arg13[%c6_159, %c0_160, %c0_161] : memref<8x8x32xf32, #tpu.memory_space<vmem>>, vector<1x8x32xf32>
    %285 = vector.shape_cast %284 : vector<1x8x32xf32> to vector<8x32xf32>
    %286 = vector.shape_cast %272 : vector<8x32xf32> to vector<1x8x32xf32>
    tpu.vector_store %arg13[%c6_159, %c0_160, %c0_161], %286 {strides = array<i32>} : memref<8x8x32xf32, #tpu.memory_space<vmem>>, vector<1x8x32xf32>,
    %c7 = arith.constant 7 : index
    %c0_162 = arith.constant 0 : index
    %c0_163 = arith.constant 0 : index
    %287 = vector.load %arg2[%c7, %c0_162, %c0_163] : memref<8x8x16xf32, #tpu.memory_space<vmem>>, vector<1x8x16xf32>
    %288 = vector.shape_cast %287 : vector<1x8x16xf32> to vector<8x16xf32>
    %cst_164 = arith.constant dense<0.000000e+00> : vector<8x128xf32>
    %289 = tpu.matmul %288, %3, %cst_164 {dimension_numbers = #tpu.dot_dimension_numbers<[1], [0], [0], [1], [0, 0, 1, 1], [], []>} : vector<8x16xf32>, vector<16x128xf32>, vector<8x128xf32> -> vector<8x128xf32>
    %cst_165 = arith.constant dense<0.000000e+00> : vector<8x128xf32>
    %290 = tpu.matmul %280, %4, %cst_165 {dimension_numbers = #tpu.dot_dimension_numbers<[1], [0], [0], [1], [0, 0, 1, 1], [], []>} : vector<8x32xf32>, vector<32x128xf32>, vector<8x128xf32> -> vector<8x128xf32>
    %c7_166 = arith.constant 7 : index
    %c0_167 = arith.constant 0 : index
    %291 = vector.load %arg7[%c7_166, %c0_167] : memref<8x128xf32, #tpu.memory_space<vmem>>, vector<1x128xf32>
    %c7_168 = arith.constant 7 : index
    %c0_169 = arith.constant 0 : index
    %292 = vector.load %arg8[%c7_168, %c0_169] : memref<8x128xf32, #tpu.memory_space<vmem>>, vector<1x128xf32>
    %c7_170 = arith.constant 7 : index
    %c0_171 = arith.constant 0 : index
    %293 = vector.load %arg9[%c7_170, %c0_171] : memref<8x128xf32, #tpu.memory_space<vmem>>, vector<1x128xf32>
    %294 = vector.broadcast %291 : vector<1x128xf32> to vector<8x128xf32>
    %295 = arith.mulf %289, %294 : vector<8x128xf32>
    %296 = vector.broadcast %292 : vector<1x128xf32> to vector<8x128xf32>
    %297 = arith.mulf %290, %296 : vector<8x128xf32>
    %298 = arith.addf %295, %297 : vector<8x128xf32>
    %299 = vector.broadcast %293 : vector<1x128xf32> to vector<8x128xf32>
    %300 = arith.addf %298, %299 : vector<8x128xf32>
    %301 = math.tanh %300 : vector<8x128xf32>
    %cst_172 = arith.constant 5.000000e-01 : f32
    %302 = vector.broadcast %cst_172 : f32 to vector<8x128xf32>
    %303 = arith.mulf %302, %301 : vector<8x128xf32>
    %cst_173 = arith.constant 5.000000e-01 : f32
    %304 = vector.broadcast %cst_173 : f32 to vector<8x128xf32>
    %305 = arith.addf %303, %304 : vector<8x128xf32>
    %306 = vector.extract_strided_slice %305 {offsets = [0, 0], sizes = [8, 32], strides = [1, 1]} : vector<8x128xf32> to vector<8x32xf32>
    %307 = vector.extract_strided_slice %305 {offsets = [0, 32], sizes = [8, 32], strides = [1, 1]} : vector<8x128xf32> to vector<8x32xf32>
    %308 = vector.extract_strided_slice %305 {offsets = [0, 64], sizes = [8, 32], strides = [1, 1]} : vector<8x128xf32> to vector<8x32xf32>
    %309 = vector.extract_strided_slice %301 {offsets = [0, 96], sizes = [8, 32], strides = [1, 1]} : vector<8x128xf32> to vector<8x32xf32>
    %310 = arith.mulf %306, %272 : vector<8x32xf32>
    %311 = arith.mulf %307, %309 : vector<8x32xf32>
    %312 = arith.addf %310, %311 : vector<8x32xf32>
    %c7_174 = arith.constant 7 : index
    %c0_175 = arith.constant 0 : index
    %313 = vector.load %arg10[%c7_174, %c0_175] : memref<8x32xf32, #tpu.memory_space<vmem>>, vector<1x32xf32>
    %314 = vector.broadcast %313 : vector<1x32xf32> to vector<8x32xf32>
    %315 = arith.mulf %312, %314 : vector<8x32xf32>
    %c7_176 = arith.constant 7 : index
    %c0_177 = arith.constant 0 : index
    %316 = vector.load %arg11[%c7_176, %c0_177] : memref<8x32xf32, #tpu.memory_space<vmem>>, vector<1x32xf32>
    %317 = vector.broadcast %316 : vector<1x32xf32> to vector<8x32xf32>
    %318 = arith.addf %315, %317 : vector<8x32xf32>
    %319 = math.tanh %318 : vector<8x32xf32>
    %320 = arith.mulf %308, %319 : vector<8x32xf32>
    %c7_178 = arith.constant 7 : index
    %c0_179 = arith.constant 0 : index
    %c0_180 = arith.constant 0 : index
    %321 = vector.load %arg12[%c7_178, %c0_179, %c0_180] : memref<8x8x32xf32, #tpu.memory_space<vmem>>, vector<1x8x32xf32>
    %322 = vector.shape_cast %321 : vector<1x8x32xf32> to vector<8x32xf32>
    %323 = vector.shape_cast %320 : vector<8x32xf32> to vector<1x8x32xf32>
    tpu.vector_store %arg12[%c7_178, %c0_179, %c0_180], %323 {strides = array<i32>} : memref<8x8x32xf32, #tpu.memory_space<vmem>>, vector<1x8x32xf32>,
    %c7_181 = arith.constant 7 : index
    %c0_182 = arith.constant 0 : index
    %c0_183 = arith.constant 0 : index
    %324 = vector.load %arg13[%c7_181, %c0_182, %c0_183] : memref<8x8x32xf32, #tpu.memory_space<vmem>>, vector<1x8x32xf32>
    %325 = vector.shape_cast %324 : vector<1x8x32xf32> to vector<8x32xf32>
    %326 = vector.shape_cast %312 : vector<8x32xf32> to vector<1x8x32xf32>
    tpu.vector_store %arg13[%c7_181, %c0_182, %c0_183], %326 {strides = array<i32>} : memref<8x8x32xf32, #tpu.memory_space<vmem>>, vector<1x8x32xf32>,
    %c0_184 = arith.constant 0 : index
    %c0_185 = arith.constant 0 : index
    %327 = vector.load %arg14[%c0_184, %c0_185] : memref<8x32xf32, #tpu.memory_space<vmem>>, vector<8x32xf32>
    tpu.vector_store %arg14[%c0_184, %c0_185], %320 {strides = array<i32>} : memref<8x32xf32, #tpu.memory_space<vmem>>, vector<8x32xf32>,
    %c0_186 = arith.constant 0 : index
    %c0_187 = arith.constant 0 : index
    %328 = vector.load %arg15[%c0_186, %c0_187] : memref<8x32xf32, #tpu.memory_space<vmem>>, vector<8x32xf32>
    tpu.vector_store %arg15[%c0_186, %c0_187], %312 {strides = array<i32>} : memref<8x32xf32, #tpu.memory_space<vmem>>, vector<8x32xf32>,
    return
  }
  func.func @transform_0(%arg0: i32, %arg1: i32) -> (i32, i32, i32) {
    %c0_i32 = arith.constant 0 : i32
    %c0_i32_0 = arith.constant 0 : i32
    return %arg1, %arg0, %c0_i32 : i32, i32, i32
  }
  func.func @transform_1(%arg0: i32, %arg1: i32) -> (i32, i32) {
    %c0_i32 = arith.constant 0 : i32
    %c0_i32_0 = arith.constant 0 : i32
    return %arg0, %c0_i32 : i32, i32
  }
  func.func @transform_2(%arg0: i32, %arg1: i32) -> (i32, i32) {
    %c0_i32 = arith.constant 0 : i32
    %c0_i32_0 = arith.constant 0 : i32
    return %arg0, %c0_i32 : i32, i32
  }
  func.func @transform_3(%arg0: i32, %arg1: i32) -> (i32, i32) {
    %c0_i32 = arith.constant 0 : i32
    %c0_i32_0 = arith.constant 0 : i32
    %c0_i32_1 = arith.constant 0 : i32
    return %c0_i32, %c0_i32_0 : i32, i32
  }
  func.func @transform_4(%arg0: i32, %arg1: i32) -> (i32, i32) {
    %c0_i32 = arith.constant 0 : i32
    %c0_i32_0 = arith.constant 0 : i32
    %c0_i32_1 = arith.constant 0 : i32
    return %c0_i32, %c0_i32_0 : i32, i32
  }
  func.func @transform_5(%arg0: i32, %arg1: i32) -> (i32, i32) {
    %c0_i32 = arith.constant 0 : i32
    %c0_i32_0 = arith.constant 0 : i32
    return %arg1, %c0_i32 : i32, i32
  }
  func.func @transform_6(%arg0: i32, %arg1: i32) -> (i32, i32) {
    %c0_i32 = arith.constant 0 : i32
    %c0_i32_0 = arith.constant 0 : i32
    return %arg1, %c0_i32 : i32, i32
  }
  func.func @transform_7(%arg0: i32, %arg1: i32) -> (i32, i32) {
    %c0_i32 = arith.constant 0 : i32
    %c0_i32_0 = arith.constant 0 : i32
    return %arg1, %c0_i32 : i32, i32
  }
  func.func @transform_8(%arg0: i32, %arg1: i32) -> (i32, i32) {
    %c0_i32 = arith.constant 0 : i32
    %c0_i32_0 = arith.constant 0 : i32
    return %arg1, %c0_i32 : i32, i32
  }
  func.func @transform_9(%arg0: i32, %arg1: i32) -> (i32, i32) {
    %c0_i32 = arith.constant 0 : i32
    %c0_i32_0 = arith.constant 0 : i32
    return %arg1, %c0_i32 : i32, i32
  }
  func.func @transform_10(%arg0: i32, %arg1: i32) -> (i32, i32, i32) {
    %c0_i32 = arith.constant 0 : i32
    %c0_i32_0 = arith.constant 0 : i32
    return %arg1, %arg0, %c0_i32 : i32, i32, i32
  }
  func.func @transform_11(%arg0: i32, %arg1: i32) -> (i32, i32, i32) {
    %c0_i32 = arith.constant 0 : i32
    %c0_i32_0 = arith.constant 0 : i32
    return %arg1, %arg0, %c0_i32 : i32, i32, i32
  }
}

</mosaic_0001>

<bundles_post_ra>
// kernel: tpu_custom_call.1
= control target key start
LH: loop header
LB: loop body
LE: loop exit
PB: predicated region body
PF: predicated region fallthrough
CT: control target
= control target key end

     0   :  { %s4290_s0 = inlined_call_operand.hbm [shape: f32[16,8,16], index: 0, kind: input, shape index: {}]   ;;  %s4291_s1 = inlined_call_operand.hbm [shape: f32[8,32], index: 1, kind: input, shape index: {}]   ;;  %s4292_s2 = inlined_call_operand.hbm [shape: f32[8,32], index: 2, kind: input, shape index: {}]   ;;  %s4293_s3 = inlined_call_operand.hbm [shape: f32[16,128], index: 3, kind: input, shape index: {}]   ;;  %s4294_s4 = inlined_call_operand.hbm [shape: f32[32,128], index: 4, kind: input, shape index: {}]   ;;  %s4295_s5 = inlined_call_operand.vmem [shape: f32[16,128], index: 5, kind: input, shape index: {}]   ;;  %s4296_s6 = inlined_call_operand.hbm [shape: f32[16,128], index: 6, kind: input, shape index: {}]   ;;  %s4297_s7 = inlined_call_operand.hbm [shape: f32[16,128], index: 7, kind: input, shape index: {}]   ;;  %s4298_s8 = inlined_call_operand.hbm [shape: f32[16,32], index: 8, kind: input, shape index: {}]   ;;  %s4299_s9 = inlined_call_operand.vmem [shape: f32[16,32], index: 9, kind: input, shape index: {}]   ;;  %s4300_s10 = inlined_call_operand.hbm [shape: f32[16,8,32], index: 10, kind: output, shape index: {0}]   ;;  %s4301_s11 = inlined_call_operand.hbm [shape: f32[16,8,32], index: 11, kind: output, shape index: {1}]  }
   0x1   :  { %4330 = sst [smem:[#allocation36_spill]] %s4291_s1 }
   0x2   :  { %4331 = sst [smem:[#allocation37_spill]] %s4293_s3 }
   0x3   :  { %4332 = sst [smem:[#allocation38_spill]] %s4295_s5 }
   0x4   :  { %4333 = sst [smem:[#allocation39_spill]] %s4296_s6 }
   0x5   :  { %4334 = sst [smem:[#allocation40_spill]] %s4299_s9 }
   0x6   :  { %4335 = sst [smem:[#allocation41_spill]] %s4300_s10 }
   0x7   :  { %4336 = sst [smem:[#allocation42_spill]] %s4301_s11 }
   0x8   :  { %17 = vsyncpa [#allocation5], 0 }
   0x9   :  { %19 = vsyncpa [#allocation5 + $0x1], 0 }
   0xa   :  { %20 = vsyncpa [#allocation8], 0 }
   0xb   :  { %21 = vsyncpa [#allocation11], 0 }
   0xc   :  { %22 = vsyncpa [#allocation14], 0 }
   0xd   :  { %24 = vsyncpa [#allocation14 + $0x1], 0 }
   0xe   :  { %25 = vsyncpa [#allocation17], 0 }
   0xf   :  { %27 = vsyncpa [#allocation17 + $0x1], 0 }
  0x10   :  { %28 = vsyncpa [#allocation6], 0 }
  0x11   :  { %30 = vsyncpa [#allocation6 + $0x1], 0 }
  0x12   :  { %31 = vsyncpa [#allocation20], 0 }
  0x13   :  { %33 = vsyncpa [#allocation20 + $0x1], 0  ;;  %s3609_s17 = smov 0   ;;  %s3611_s18 = smov 0  }
  0x14   :  { %s3613_s19 = smov 0   ;;  %s3615_s20 = smov 0  }
  0x15   :  { %s3617_s21 = smov 0   ;;  %s3619_s22 = smov 0  }
  0x16 LB: > { %4337 = sst [smem:[#allocation28_spill]] %s3508_s17  ;;  %s3640_s23 = sadd.s32 4294967295, %s3528_s22   ;;  %s3528_s22 = sphi %s3619_s22, %s39_s22   ;;  %s3524_s21 = sphi %s3617_s21, %s4390_s21   ;;  %s3520_s20 = sphi %s3615_s20, %s4389_s20   ;;  %s3516_s19 = sphi %s3613_s19, %s4385_s19   ;;  %s3512_s18 = sphi %s3611_s18, %s4388_s18   ;;  %s3508_s17 = sphi %s3609_s17, %s4387_s17  }
  0x17   : > { %4338 = sst [smem:[#allocation29_spill]] %s3516_s19  ;;  %s2604_s24 = sadd.s32 4294967294, %s3528_s22  }
  0x18   : > { %4339 = sst [smem:[#allocation30_spill]] %s3520_s20  ;;  %p73_p0 = scmp.ne.s32.totalorder %s3512_s18, %s3508_s17 }
  0x19   : > { %4340 = sst [smem:[#allocation31_spill]] %s3528_s22  ;;  %p4304_p1 = scmp.eq.s32.totalorder %s3640_s23, 0 }
  0x1a   : > { %p329_p3 = scmp.eq.s32.totalorder %s2604_s24, 1  ;;  %p2605_p5 = scmp.ge.s32.totalorder %s3528_s22, 1 }
  0x1b   : > { %p3649_p4 = por %p4304_p1, %p73_p0  ;;  %p364_p7 = scmp.lt.s32.totalorder %s3528_s22, 3 }
  0x1c   : > { %p3654_p6 = por %p329_p3, %p73_p0  ;;  %s3530_s28 = smov [#allocation7]  }
  0x1d   : > { %s4341_s25 = scalar_select %p3649_p4, 1, 0 }
  0x1e   : > { %s4342_s26 = scalar_select %p3654_p6, 1, 0 }
  0x1f   : > { %p3659_p8 = pnand %p2605_p5, %p364_p7  ;;  %s379_s29 = sshll.u32 %s3530_s28, 4  ;;  %s380_s29 = int_to_ptr.vmem [resolvable:$true] %s379_s29 }
  0x20   : > { %4343 = sst [smem:[#allocation32_spill]] %s4342_s26  ;;  %s3531_s30 = smov [#allocation10]  }
  0x21   : > { %s4344_s27 = scalar_select %p3659_p8, 1, 0 }
  0x22   : > { %p3030_p10 = pneg %p3659_p8  ;;  %s402_s12 = sshll.u32 %s3531_s30, 4  ;;  %s3672_s12 = int_to_ptr.vmem [resolvable:$true] %s402_s12 }
  0x23   : > { %s4346_s1 = sld [smem:[#allocation36_spill]] }
  0x24   : > { %p3668_p11 = pnand %p3030_p10, %p4304_p1 }
  0x26   : > { %s4345_s13 = scalar_select %p3668_p11, 1, 0 }
  0x27   : > { %p3682_p13 = pneg %p3668_p11 }
  0x29   : > { %s3166_s16 = scalar_lea.hbm %s4346_s1, 128 }
  0x2a   : > { %p3167_p12 = scmp.ne.s32.totalorder %s4346_s1, %s3166_s16  ;;  %p3173_p5 = scmp.lt.u32.totalorder %s3166_s16, %s4346_s1 }
  0x2b   : > { %s4347_s26 = scalar_select %p3682_p13, 1, 0 }
  0x2c   : > { %p3169_p0 = pnand %p3682_p13, %p3167_p12 }
  0x2e   : > { %p3170_p3 = pneg %p3169_p0 }
  0x30   : > { %p3175_p7 = pnand %p3173_p5, %p3170_p3 }
  0x32   : > { %3178 = shalt.err (!%p3175_p7)
}
  0x33   : > { %s3179_s14 = scalar_lea.vmem %s380_s29, 128  ;;  %p3187_p2 = scmp.lt.s32.totalorder %s380_s29, %s380_s29 }
  0x34   : > { %p3180_p10 = scmp.ne.s32.totalorder %s380_s29, %s3179_s14  ;;  %p3188_p6 = scmp.lt.s32.totalorder %s3179_s14, %s3179_s14 }
  0x36   : > { %p3182_p9 = pnand %p3180_p10, %p3682_p13  ;;  %p3189_p4 = por %p3188_p6, %p3187_p2 }
  0x38   : > { %p3183_p1 = pneg %p3182_p9 }
  0x3a   : > { %p3190_p8 = pnand %p3189_p4, %p3183_p1 }
  0x3c   : > { %3193 = shalt.err (!%p3190_p8)
}
  0x3d   : > { %3033 = dma.hbm_to_vmem [thread:$0]  (!%p3668_p11), %s4346_s1, 128, %s380_s29, [#allocation8]  }
  0x3e   : > { %s4348_s3 = sld [smem:[#allocation37_spill]] }
  0x44   : > { %s3194_s28 = scalar_lea.hbm %s4348_s3, 256 }
  0x45   : > { %p3195_p9 = scmp.ne.s32.totalorder %s4348_s3, %s3194_s28  ;;  %p3201_p1 = scmp.lt.u32.totalorder %s3194_s28, %s4348_s3 }
  0x47   : > { %p3197_p12 = pnand %p3195_p9, %p3682_p13 }
  0x49   : > { %p3198_p2 = pneg %p3197_p12 }
  0x4b   : > { %p3203_p4 = pnand %p3201_p1, %p3198_p2 }
  0x4d   : > { %3206 = shalt.err (!%p3203_p4)
}
  0x4e   : > { %s3207_s29 = scalar_lea.vmem %s3672_s12, 256  ;;  %p3215_p3 = scmp.lt.s32.totalorder %s3672_s12, %s3672_s12 }
  0x4f   : > { %p3208_p6 = scmp.ne.s32.totalorder %s3672_s12, %s3207_s29  ;;  %p3216_p5 = scmp.lt.s32.totalorder %s3207_s29, %s3207_s29 }
  0x51   : > { %p3210_p8 = pnand %p3208_p6, %p3682_p13  ;;  %p3217_p7 = por %p3216_p5, %p3215_p3 }
  0x53   : > { %p3211_p0 = pneg %p3210_p8 }
  0x55   : > { %p3218_p10 = pnand %p3217_p7, %p3211_p0 }
  0x57   : > { %3221 = shalt.err (!%p3218_p10)
}
  0x58   : > { %s4309_s10 = smov 128   ;;  %s4311_s11 = smov 8  }
  0x59   : > { %3039 = dma.hbm_to_vmem [thread:$0]  (!%p3668_p11), %s4348_s3, 256, %s3672_s12, [#allocation11], %s4309_s10, %s4309_s10, %s4311_s11  }
  0x5a   : > { %s48_s17 = sadd.s32 1, %s3524_s21  ;;  %s60_s16 = sadd.s32 1, %s3516_s19 }
  0x5b   : > { %p49_p9 = scmp.ge.s32.totalorder %s48_s17, 2  ;;  %p67_p12 = scmp.ne.s32.totalorder %s3516_s19, %s3512_s18 }
  0x5c   : > { %p68_p2 = scmp.eq.s32.totalorder %s3528_s22, 0  ;;  %p3067_p1 = scmp.lt.s32.totalorder %s3528_s22, 2 }
  0x5d   : > { %s4392_s17 = smov (%p49_p9, %s48_s17), 0  ;;  %p4350_p6 = scmp.eq.s32.totalorder %s3640_s23, 1 }
  0x5e   : > { %4349 = sst [smem:[#allocation33_spill]] %s4392_s17  ;;  %p69_p4 = por %p68_p2, %p67_p12 }
  0x5f   : > { %p3734_p8 = por %p4350_p6, %p67_p12  ;;  %s55_s30 = ssub.s32 %s3524_s21, %s4392_s17 }
  0x60   : > { %s3741_s14 = sand.u32 1, %s3516_s19   ;;  %p58_p0 = scmp.eq.s32.totalorder %s55_s30, 0 }
  0x61   : > { %s4351_s28 = scalar_select %p3734_p8, 1, 0 }
  0x62   : > { %p3743_p3 = pnand %p3067_p1, %p69_p4  ;;  %s458_s29 = sand.u32 1, %s3528_s22  }
  0x63   : > { %4352 = sst [smem:[#allocation34_spill]] %s4351_s28  ;;  %s3749_s15 = sshll.u32 %s3741_s14, 3 }
  0x64   : > { %s4353_s12 = scalar_select %p3743_p3, 1, 0 }
  0x65   : > { %s3752_s24 = scalar_select %p58_p0, %s3516_s19, %s60_s16  }
  0x66   : > { %s3755_s10 = sshll.u32 %s3524_s21, 7  ;;  %s4355_s6 = sld [smem:[#allocation39_spill]] }
  0x67   : > { %4354 = sst [smem:[#allocation35_spill]] %s3752_s24  ;;  %s462_s30 = scalar_lea.vmem [#allocation13], %s3749_s15 }
  0x68   : > { %s469_s17 = sshll.u32 %s462_s30, 4  ;;  %s3766_s22 = scalar_lea.sflag [#allocation14], %s458_s29  ;;  %s3764_s17 = int_to_ptr.vmem [resolvable:$true] %s469_s17 }
  0x69   : > { %p3772_p7 = pneg %p3743_p3 }
  0x6b   : > { %s4356_s24 = scalar_select %p3772_p7, 1, 0 }
  0x6c   : > { %s3761_s3 = scalar_lea.hbm %s4355_s6, %s3755_s10  ;;  %s3227_s19 = scalar_lea.hbm %s4355_s6, 256 }
  0x6d   : > { %s3222_s16 = scalar_lea.hbm %s3761_s3, 128  ;;  %p3228_p12 = scmp.lt.u32.totalorder %s3761_s3, %s4355_s6 }
  0x6e   : > { %p3223_p5 = scmp.ne.s32.totalorder %s3761_s3, %s3222_s16  ;;  %p3229_p2 = scmp.lt.u32.totalorder %s3227_s19, %s3222_s16 }
  0x6f   : > { %p3231_p4 = scmp.lt.u32.totalorder %s3222_s16, %s3761_s3 }
  0x70   : > { %p3225_p10 = pnand %p3772_p7, %p3223_p5  ;;  %p3230_p1 = por %p3229_p2, %p3228_p12 }
  0x72   : > { %p3226_p9 = pneg %p3225_p10  ;;  %p3232_p6 = por %p3231_p4, %p3230_p1 }
  0x74   : > { %p3233_p0 = pnand %p3232_p6, %p3226_p9 }
  0x76   : > { %3236 = shalt.err (!%p3233_p0)
}
  0x77   : > { %s3237_s29 = scalar_lea.vmem %s3764_s17, 128  ;;  %s3534_s1 = smov [#allocation13]  }
  0x78   : > { %p3238_p5 = scmp.ne.s32.totalorder %s3764_s17, %s3237_s29  ;;  %s3242_s11 = sshll.u32 %s3534_s1, 4  ;;  %s3243_s11 = int_to_ptr.vmem [resolvable:$false] %s3242_s11 }
  0x79   : > { %s3244_s28 = scalar_lea.vmem %s3243_s11, 256  ;;  %p3245_p11 = scmp.lt.s32.totalorder %s3764_s17, %s3243_s11 }
  0x7a   : > { %p3240_p10 = pnand %p3238_p5, %p3772_p7  ;;  %p3246_p13 = scmp.lt.s32.totalorder %s3244_s28, %s3237_s29 }
  0x7c   : > { %p3241_p8 = pneg %p3240_p10  ;;  %p3247_p12 = por %p3246_p13, %p3245_p11 }
  0x7e   : > { %p3248_p2 = pnand %p3247_p12, %p3241_p8 }
  0x80   : > { %3251 = shalt.err (!%p3248_p2)
}
  0x81   : > { %3049 = dma.hbm_to_vmem [thread:$0]  (!%p3743_p3), %s3761_s3, 128, %s3764_s17, %s3766_s22  }
  0x82   : > { %s3535_s19 = smov [#allocation9]   ;;  %s3536_s30 = smov [#allocation12]  }
  0x83   : > { %s392_s16 = sshll.u32 %s3535_s19, 4  ;;  %s415_s6 = sshll.u32 %s3536_s30, 4  ;;  %s393_s16 = int_to_ptr.vmem [resolvable:$true] %s392_s16  ;;  %s416_s6 = int_to_ptr.vmem [resolvable:$true] %s415_s6 }
  0x84   : > { %s3252_s11 = scalar_lea.hbm %s4292_s2, 128  ;;  %p4357_p13 = scmp.ne.s32.totalorder %s4347_s26, 0 }
  0x85   : > { %p3253_p11 = scmp.ne.s32.totalorder %s4292_s2, %s3252_s11  ;;  %p3259_p1 = scmp.lt.u32.totalorder %s3252_s11, %s4292_s2 }
  0x87   : > { %p3255_p8 = pnand %p3253_p11, %p4357_p13 }
  0x89   : > { %p3256_p9 = pneg %p3255_p8 }
  0x8b   : > { %p3261_p4 = pnand %p3259_p1, %p3256_p9 }
  0x8d   : > { %3264 = shalt.err (!%p3261_p4)
}
  0x8e   : > { %s3265_s3 = scalar_lea.vmem %s393_s16, 128  ;;  %p3273_p10 = scmp.lt.s32.totalorder %s393_s16, %s393_s16 }
  0x8f   : > { %p3266_p6 = scmp.ne.s32.totalorder %s393_s16, %s3265_s3  ;;  %p3274_p12 = scmp.lt.s32.totalorder %s3265_s3, %s3265_s3 }
  0x91   : > { %p3268_p0 = pnand %p3266_p6, %p4357_p13  ;;  %p3275_p2 = por %p3274_p12, %p3273_p10 }
  0x93   : > { %p3269_p5 = pneg %p3268_p0 }
  0x95   : > { %p3276_p3 = pnand %p3275_p2, %p3269_p5 }
  0x97   : > { %3279 = shalt.err (!%p3276_p3)
}
  0x98   : > { %p4358_p11 = scmp.ne.s32.totalorder %s4345_s13, 0  ;;  %s3280_s19 = scalar_lea.hbm %s4294_s4, 512 }
  0x99   : > { %p3281_p8 = scmp.ne.s32.totalorder %s4294_s4, %s3280_s19  ;;  %p3287_p3 = scmp.lt.u32.totalorder %s3280_s19, %s4294_s4 }
  0x9a   : > { %3036 = dma.hbm_to_vmem [thread:$0]  (!%p4358_p11), %s4292_s2, 128, %s393_s16, [#allocation8]  }
  0x9b   : > { %p3283_p9 = pnand %p3281_p8, %p4357_p13 }
  0x9d   : > { %p3284_p1 = pneg %p3283_p9 }
  0x9f   : > { %p3289_p4 = pnand %p3287_p3, %p3284_p1 }
  0xa1   : > { %3292 = shalt.err (!%p3289_p4)
}
  0xa2   : > { %s3293_s28 = scalar_lea.vmem %s416_s6, 512  ;;  %p3301_p10 = scmp.lt.s32.totalorder %s416_s6, %s416_s6 }
  0xa3   : > { %p3294_p6 = scmp.ne.s32.totalorder %s416_s6, %s3293_s28  ;;  %p3302_p12 = scmp.lt.s32.totalorder %s3293_s28, %s3293_s28 }
  0xa5   : > { %p3296_p0 = pnand %p3294_p6, %p4357_p13  ;;  %p3303_p2 = por %p3302_p12, %p3301_p10 }
  0xa7   : > { %p3297_p5 = pneg %p3296_p0 }
  0xa9   : > { %p3304_p7 = pnand %p3303_p2, %p3297_p5 }
  0xab   : > { %3307 = shalt.err (!%p3304_p7)
}
  0xac   : > { %s4359_s16 = smov 8   ;;  %s4360_s3 = smov 128  }
  0xad   : > { %3042 = dma.hbm_to_vmem [thread:$0]  (!%p4358_p11), %s4294_s4, 512, %s416_s6, [#allocation11], %s4360_s3, %s4360_s3, %s4359_s16  }
  0xae   : > { %s2611_s26 = sshll.u32 %s3741_s14, 6  ;;  %s2719_s5 = sshll.u32 %s3524_s21, 10 }
  0xaf   : > { %s3840_s30 = scalar_lea.hbm %s4290_s0, %s2719_s5  ;;  %s433_s13 = scalar_lea.vmem [#allocation4], %s2611_s26 }
  0xb0   : > { %s441_s1 = sshll.u32 %s433_s13, 4  ;;  %s3848_s28 = scalar_lea.hbm %s4297_s7, %s3755_s10  ;;  %s3842_s1 = int_to_ptr.vmem [resolvable:$true] %s441_s1 }
  0xb1   : > { %s430_s6 = scalar_lea.sflag [#allocation5], %s3741_s14  ;;  %s3308_s9 = scalar_lea.hbm %s3840_s30, 1024 }
  0xb2   : > { %p3309_p7 = scmp.ne.s32.totalorder %s3840_s30, %s3308_s9  ;;  %p4361_p13 = scmp.ne.s32.totalorder %s4356_s24, 0 }
  0xb3   : > { %s3313_s20 = scalar_lea.hbm %s4290_s0, 2048  ;;  %p3314_p9 = scmp.lt.u32.totalorder %s3840_s30, %s4290_s0 }
  0xb4   : > { %p3311_p11 = pnand %p3309_p7, %p4361_p13  ;;  %p3315_p1 = scmp.lt.u32.totalorder %s3313_s20, %s3308_s9 }
  0xb5   : > { %p3317_p4 = scmp.lt.u32.totalorder %s3308_s9, %s3840_s30 }
  0xb6   : > { %p3312_p8 = pneg %p3311_p11  ;;  %p3316_p3 = por %p3315_p1, %p3314_p9 }
  0xb8   : > { %p3318_p6 = por %p3317_p4, %p3316_p3 }
  0xba   : > { %p3319_p0 = pnand %p3318_p6, %p3312_p8 }
  0xbc   : > { %3322 = shalt.err (!%p3319_p0)
}
  0xbd   : > { %s3323_s13 = scalar_lea.vmem %s3842_s1, 1024  ;;  %s3537_s11 = smov [#allocation4]  }
  0xbe   : > { %p3324_p5 = scmp.ne.s32.totalorder %s3842_s1, %s3323_s13  ;;  %s3328_s29 = sshll.u32 %s3537_s11, 4  ;;  %s3329_s29 = int_to_ptr.vmem [resolvable:$false] %s3328_s29 }
  0xbf   : > { %s3330_s17 = scalar_lea.vmem %s3329_s29, 2048  ;;  %p3331_p2 = scmp.lt.s32.totalorder %s3842_s1, %s3329_s29 }
  0xc0   : > { %p3326_p10 = pnand %p3324_p5, %p4361_p13  ;;  %p3332_p7 = scmp.lt.s32.totalorder %s3330_s17, %s3323_s13 }
  0xc2   : > { %p3327_p12 = pneg %p3326_p10  ;;  %p3333_p11 = por %p3332_p7, %p3331_p2 }
  0xc4   : > { %p3334_p9 = pnand %p3333_p11, %p3327_p12 }
  0xc6   : > { %3337 = shalt.err (!%p3334_p9)
}
  0xc7   : > { %p4362_p8 = scmp.ne.s32.totalorder %s4353_s12, 0  ;;  %s480_s9 = scalar_lea.vmem [#allocation15], %s3749_s15 }
  0xc8   : > { %s487_s5 = sshll.u32 %s480_s9, 4  ;;  %s3338_s20 = scalar_lea.hbm %s3848_s28, 128  ;;  %s488_s5 = int_to_ptr.vmem [resolvable:$true] %s487_s5 }
  0xc9   : > { %3046 = dma.hbm_to_vmem [thread:$0]  (!%p4362_p8), %s3840_s30, 1024, %s3842_s1, %s430_s6, %s4360_s3, %s4360_s3, %s4359_s16  }
  0xca   : > { %p3339_p1 = scmp.ne.s32.totalorder %s3848_s28, %s3338_s20  ;;  %s3343_s13 = scalar_lea.hbm %s4297_s7, 256 }
  0xcb   : > { %p3344_p6 = scmp.lt.u32.totalorder %s3848_s28, %s4297_s7  ;;  %p3345_p0 = scmp.lt.u32.totalorder %s3343_s13, %s3338_s20 }
  0xcc   : > { %p3341_p3 = pnand %p3339_p1, %p4361_p13  ;;  %p3347_p10 = scmp.lt.u32.totalorder %s3338_s20, %s3848_s28 }
  0xcd   : > { %p3346_p5 = por %p3345_p0, %p3344_p6 }
  0xce   : > { %p3342_p4 = pneg %p3341_p3 }
  0xcf   : > { %p3348_p12 = por %p3347_p10, %p3346_p5 }
  0xd1   : > { %p3349_p2 = pnand %p3348_p12, %p3342_p4 }
  0xd3   : > { %3352 = shalt.err (!%p3349_p2)
}
  0xd4   : > { %s3353_s16 = scalar_lea.vmem %s488_s5, 128  ;;  %s3538_s3 = smov [#allocation15]  }
  0xd5   : > { %p3354_p7 = scmp.ne.s32.totalorder %s488_s5, %s3353_s16  ;;  %s3358_s30 = sshll.u32 %s3538_s3, 4  ;;  %s3359_s30 = int_to_ptr.vmem [resolvable:$false] %s3358_s30 }
  0xd6   : > { %s3360_s1 = scalar_lea.vmem %s3359_s30, 256  ;;  %p3361_p1 = scmp.lt.s32.totalorder %s488_s5, %s3359_s30 }
  0xd7   : > { %p3356_p11 = pnand %p3354_p7, %p4361_p13  ;;  %p3362_p3 = scmp.lt.s32.totalorder %s3360_s1, %s3353_s16 }
  0xd9   : > { %p3357_p9 = pneg %p3356_p11  ;;  %p3363_p8 = por %p3362_p3, %p3361_p1 }
  0xdb   : > { %p3364_p0 = pnand %p3363_p8, %p3357_p9 }
  0xdd   : > { %3367 = shalt.err (!%p3364_p0)
}
  0xde   : > { %p4363_p6 = scmp.ne.s32.totalorder %s4353_s12, 0  ;;  %s3900_s9 = scalar_lea.hbm %s4298_s8, %s3755_s10 }
  0xdf   : > { %s498_s20 = scalar_lea.vmem [#allocation16], %s3749_s15  ;;  %s495_s26 = scalar_lea.sflag [#allocation17], %s3741_s14 }
  0xe0   : > { %3052 = dma.hbm_to_vmem [thread:$0]  (!%p4363_p6), %s3848_s28, 128, %s488_s5, %s3766_s22  }
  0xe1   : > { %s505_s19 = sshll.u32 %s498_s20, 4  ;;  %s3368_s13 = scalar_lea.hbm %s3900_s9, 128  ;;  %s506_s19 = int_to_ptr.vmem [resolvable:$true] %s505_s19 }
  0xe2   : > { %p3369_p8 = scmp.ne.s32.totalorder %s3900_s9, %s3368_s13  ;;  %s3373_s28 = scalar_lea.hbm %s4298_s8, 256 }
  0xe3   : > { %p3374_p10 = scmp.lt.u32.totalorder %s3900_s9, %s4298_s8  ;;  %p3375_p12 = scmp.lt.u32.totalorder %s3373_s28, %s3368_s13 }
  0xe4   : > { %p3371_p4 = pnand %p3369_p8, %p4361_p13  ;;  %p3377_p7 = scmp.lt.u32.totalorder %s3368_s13, %s3900_s9 }
  0xe5   : > { %p3376_p2 = por %p3375_p12, %p3374_p10 }
  0xe6   : > { %p3372_p5 = pneg %p3371_p4 }
  0xe7   : > { %p3378_p11 = por %p3377_p7, %p3376_p2 }
  0xe9   : > { %p3379_p9 = pnand %p3378_p11, %p3372_p5 }
  0xeb   : > { %3382 = shalt.err (!%p3379_p9)
}
  0xec   : > { %s3383_s14 = scalar_lea.vmem %s506_s19, 128  ;;  %s3539_s15 = smov [#allocation16]  }
  0xed   : > { %p3384_p1 = scmp.ne.s32.totalorder %s506_s19, %s3383_s14  ;;  %s3388_s29 = sshll.u32 %s3539_s15, 4  ;;  %s3389_s29 = int_to_ptr.vmem [resolvable:$false] %s3388_s29 }
  0xee   : > { %s3390_s16 = scalar_lea.vmem %s3389_s29, 256  ;;  %p3391_p8 = scmp.lt.s32.totalorder %s506_s19, %s3389_s29 }
  0xef   : > { %p3386_p3 = pnand %p3384_p1, %p4361_p13  ;;  %p3392_p4 = scmp.lt.s32.totalorder %s3390_s16, %s3383_s14 }
  0xf1   : > { %p3387_p0 = pneg %p3386_p3  ;;  %p3393_p6 = por %p3392_p4, %p3391_p8 }
  0xf3   : > { %p3394_p10 = pnand %p3393_p6, %p3387_p0 }
  0xf5   : > { %3397 = shalt.err (!%p3394_p10)
}
  0xf6   : > { %p4364_p12 = scmp.ne.s32.totalorder %s4353_s12, 0  ;;  %p4365_p5 = scmp.ne.s32.totalorder %s4344_s27, 0 }
  0xf7   : > { %s3924_s24 = sand.u32 (!%p4365_p5), 1, %s3512_s18   ;;  %p4366_p13 = scmp.ne.s32.totalorder (!%p4365_p5), %s4341_s25, 0 }
  0xf8   : > { %3055 = dma.hbm_to_vmem [thread:$0]  (!%p4364_p12), %s3900_s9, 128, %s506_s19, %s495_s26  }
  0xf9   : > { %521 = sbr.rel (%p4365_p5) target bundleno = 5994 (0x176a), region = 60  ;;  %s2621_s3 = sshll.u32 (!%p4365_p5), %s3924_s24, 6 }
  0xfa   : > { %s524_s30 = scalar_lea.sflag (!%p4365_p5), [#allocation5], %s3924_s24  ;;  %s3928_s1 = scalar_lea.vmem (!%p4365_p5), [#allocation4], %s2621_s3 }
 0x100   : > { %3479 = dma.done.wait (%p4366_p13), %s524_s30, 1024  }
 0x101   : > { %3481 = vsyncadd (%p4366_p13), %s524_s30, 4294966272  ;;  %p4367_p6 = scmp.eq.s32.totalorder %s3640_s23, 0 }
 0x103   : > { %3483 = dma.done.wait (%p4367_p6), [#allocation8], 256   ;;  %p4368_p2 = pmov %p4367_p6 }
 0x105   : > { %3485 = vsyncadd (%p4368_p2), [#allocation8], 4294967040  ;;  %p4369_p7 = pmov %p4368_p2 }
 0x106   : > { %p4370_p11 = pmov %p4368_p2 }
 0x107   : > { %3487 = dma.done.wait (%p4369_p7), [#allocation11], 768  }
 0x108   : > { %3489 = vsyncadd (%p4370_p11), [#allocation11], 4294966528  ;;  %s548_s27 = sand.u32 1, %s3640_s23   ;;  %s2626_s12 = sshll.u32 %s3924_s24, 3 }
 0x109   : > { %s549_s6 = scalar_lea.sflag [#allocation14], %s548_s27  ;;  %s3944_s17 = scalar_lea.vmem [#allocation13], %s2626_s12 }
 0x10a   : > { %3491 = dma.done.wait (%p4366_p13), %s549_s6, 256  }
 0x10b   : > { %3493 = vsyncadd (%p4366_p13), %s549_s6, 4294967040  ;;  %s3950_s9 = scalar_lea.vmem [#allocation15], %s2626_s12  ;;  %s567_s20 = scalar_lea.sflag [#allocation17], %s3924_s24 }
 0x10c   : > { %s3953_s19 = scalar_lea.vmem [#allocation16], %s2626_s12 }
 0x10d   : > { %3495 = dma.done.wait (%p4366_p13), %s567_s20, 128  }
 0x10e   : > { %3497 = vsyncadd (%p4366_p13), %s567_s20, 4294967168  ;;  %s4371_s23 = sld [smem:[#allocation30_spill]]  ;;  %s4372_s28 = sld [smem:[#allocation38_spill]] }
 0x10f   : > { %s4373_s15 = sld [smem:[#allocation40_spill]]  ;;  %s3971_s16 = scalar_lea.vmem [#allocation18], %s2621_s3 }
 0x110   : > { %s3973_s30 = scalar_lea.vmem [#allocation19], %s2621_s3 }
 0x114   : > { %p638_p9 = scmp.lt.s32.totalorder %s4371_s23, 1  ;;  %p2633_p1 = scmp.ne.s32.totalorder %s4371_s23, 0 }
 0x115   : > { %v652_v0 = vld [vmem:[#allocation7] sm:$0xff] (!%p2633_p1)  ;;  %vm653_vm0 = vcmask (!%p2633_p1), 261120   ;;  %v655_v1 = vld [vmem:[#allocation9] sm:$0xff] (!%p2633_p1) }
 0x116   : > { %s639_s26 = scalar_select %p638_p9, %s4371_s23, 1 }
 0x117   : > { %651 = sbr.rel (%p2633_p1) target bundleno = 286 (0x11e), region = 96  ;;  %654 = vst.msk [vmem:[#allocation2] sm:$0xff] (!%p2633_p1), %vm653_vm0, %v652_v0  ;;  %656 = vst.msk [vmem:[#allocation3] sm:$0xff] (!%p2633_p1), %vm653_vm0, %v655_v1 }
 0x118   : > { %s2631_s13 = sshll.u32 %s639_s26, 3 }
 0x119   : > { %s3964_s5 = scalar_lea.vmem %s4372_s28, %s2631_s13  ;;  %s3969_s29 = scalar_lea.vmem %s4373_s15, %s2631_s13 }
 0x11e PF: > { %v657_v2 = vld [vmem:[#allocation10] sm:$0xff]  ;;  %v658_v3 = vld [vmem:[#allocation10 + $0x8] sm:$0xff]  ;;  %v3540_v4 = vmov 0.0|0.0   ;;  %vm3541_vm1 = vmmov 0   ;;  %v3542_v6 = vmov 0.0   ;;  %v659_v7 = vld [vmem:[#allocation12] sm:$0xff] }
 0x11f   : > { %2930 = vmatprep.subr.bf16.mxu1 %v3540_v4  ;;  %v3977_v5 = vpack.c.bf16 %v658_v3, %v657_v2  ;;  %2790 = vmatprep.mubr.msk.f32.mxu1 %vm3541_vm1, %v3542_v6  ;;  %v660_v8 = vld [vmem:[#allocation12 + $0x8] sm:$0xff]  ;;  %v665_v9 = vld [vmem:[%s3928_s1] sm:$0xff]  ;;  %vm666_vm2 = vcmask 130048   ;;  %v661_v11 = vld [vmem:[#allocation12 + $0x10] sm:$0xff]  ;;  %vm740_vm3 = vcmask 261120   ;;  %s3543_s25 = smov 64  }
 0x120   : > { %2939 = vmatprep.subr.bf16.mxu0 %v3540_v4  ;;  %2808 = vmatprep.mubr.msk.f32.mxu0 %vm3541_vm1, %v3542_v6  ;;  %v3986_v10 = vpack.c.bf16 %v660_v8, %v659_v7  ;;  %v662_v12 = vld [vmem:[#allocation12 + $0x18] sm:$0xff]  ;;  %v663_v14 = vld [vmem:[#allocation2] sm:$0xff]  ;;  %v2637_v18 = vld [vmem:[%s3944_s17] ss:$0 sm:$0xff]  ;;  %s3544_s3 = smov 96   ;;  %s4375_s27 = sld [smem:[#allocation34_spill]] }
 0x121   : > { %2932 = vmatpush3.bf16.msra.mxu1 %v3977_v5  ;;  %2941 = vmatpush3.bf16.msra.mxu0 %v3977_v5  ;;  %v3993_v13 = vpack.c.bf16 %v662_v12, %v661_v11  ;;  %v2636_v17 = vld [vmem:[%s3964_s5] ss:$0 sm:$0xff]  ;;  %v664_v31 = vld [vmem:[#allocation3] sm:$0xff]  ;;  %v2639_v33 = vld [vmem:[%s3953_s19] ss:$0 sm:$0xff]  ;;  %s2321_s23 = scalar_lea.sflag [#allocation20], %s3924_s24 }
 0x122   : > { %2933 = vmatprep.subr.bf16.mxu1 %v3540_v4  ;;  %2942 = vmatprep.subr.bf16.mxu0 %v3540_v4  ;;  %v2638_v23 = vld [vmem:[%s3950_s9] ss:$0 sm:$0xff]  ;;  %v2641_v39 = vld [vmem:[%s3928_s1 + $0x8] sm:$0xff]  ;;  %v2644_v46 = vld [vmem:[%s3964_s5 + $0x1] ss:$0 sm:$0xff]  ;;  %s3545_s13 = smov [#allocation19]  }
 0x123   : > { %v2640_v36 = vld [vmem:[%s3969_s29] ss:$0 sm:$0xff]  ;;  %v2645_v47 = vld [vmem:[%s3944_s17 + $0x1] ss:$0 sm:$0xff]  ;;  %v2646_v52 = vld [vmem:[%s3950_s9 + $0x1] ss:$0 sm:$0xff] }
 0x124   : > { %2791 = vmatmul.mubr.msk.f32.vlgmr.msra.gmra.mrb[0].mxu1 %vm666_vm2, %v665_v9  ;;  %2809 = vmatmul.mubr.msk.f32.vlgmr.msra.gmra.mrb[0].mxu0 %vm666_vm2, %v2641_v39  ;;  %v2647_v61 = vld [vmem:[%s3953_s19 + $0x1] ss:$0 sm:$0xff]  ;;  %v2648_v0 = vld [vmem:[%s3969_s29 + $0x1] ss:$0 sm:$0xff]  ;;  %s3402_s11 = sshll.u32 %s3545_s13, 4  ;;  %s3403_s11 = int_to_ptr.vmem [resolvable:$false] %s3402_s11 }
 0x125   : > { %2935 = vmatpush3.bf16.msra.mxu1 %v3986_v10  ;;  %2801 = vmatprep.mubr.msk.f32.mxu1 %vm3541_vm1, %v3542_v6  ;;  %v2651_v3 = vld [vmem:[%s3928_s1 + $0x10] sm:$0xff]  ;;  %s3404_s22 = scalar_lea.vmem %s3403_s11, 2048 }
 0x126   : > { %2936 = vmatprep.subr.bf16.mxu1 %v3540_v4  ;;  %2944 = vmatpush3.bf16.msra.mxu0 %v3986_v10  ;;  %p4377_p0 = scmp.ne.s32.totalorder %s4375_s27, 0 }
 0x127   : > { %2819 = vmatprep.mubr.msk.f32.mxu0 %vm3541_vm1, %v3542_v6  ;;  %2945 = vmatprep.subr.bf16.mxu0 %v3540_v4 }
 0x129   : > { %2938 = vmatpush3.bf16.msra.mxu1 %v3993_v13 }
 0x12a   : > { %2948 = vmatprep.subr.bf16.mxu1 %v3540_v4  ;;  %2947 = vmatpush3.bf16.msra.mxu0 %v3993_v13 }
 0x12b   : > { %2957 = vmatprep.subr.bf16.mxu0 %v3540_v4 }
 0x12c   : > { %2802 = vmatmul.mubr.msk.f32.vlgmr.msra.gmra.mrb[2].mxu1 %vm740_vm3, %v663_v14 }
 0x12d   : > { %2950 = vmatpush3.bf16.msra.mxu1 %v3977_v5  ;;  %2826 = vmatprep.mubr.msk.f32.mxu1 %vm3541_vm1, %v3542_v6 }
 0x12e   : > { %2951 = vmatprep.subr.bf16.mxu1 %v3540_v4 }
 0x130   : > { %2827 = vmatmul.mubr.msk.f32.vlgmr.msra.gmra.mrb[4].mxu1 %vm666_vm2, %v2651_v3 }
 0x131   : > { %2953 = vmatpush3.bf16.msra.mxu1 %v3986_v10  ;;  %2837 = vmatprep.mubr.msk.f32.mxu1 %vm3541_vm1, %v3542_v6 }
 0x132   : > { %2954 = vmatprep.subr.bf16.mxu1 %v3540_v4 }
 0x135   : > { %2956 = vmatpush3.bf16.msra.mxu1 %v3993_v13 }
 0x136   : > { %2966 = vmatprep.subr.bf16.mxu1 %v3540_v4 }
 0x1f7   : > { %v736_v15 = vpop.f32.mrb[0].mxu1  ;;  %v942_v43 = vpop.f32.mrb[0].mxu0 }
 0x1f8   : > { %v2792_v16 = vpop.f32.mrb[1].mxu1  ;;  %v821_v20 = vmul.f32 %v2636_v17, %v736_v15  ;;  %v2810_v44 = vpop.f32.mrb[1].mxu0  ;;  %v1025_v49 = vmul.f32 %v2644_v46, %v942_v43  ;;  %v2654_v15 = vld [vmem:[%s3964_s5 + $0x2] ss:$0 sm:$0xff]  ;;  %v2664_v43 = vld [vmem:[%s3964_s5 + $0x3] ss:$0 sm:$0xff] }
 0x1f9   : > { %v2655_v16 = vld [vmem:[%s3944_s17 + $0x2] ss:$0 sm:$0xff]  ;;  %v2665_v44 = vld [vmem:[%s3944_s17 + $0x3] ss:$0 sm:$0xff] }
 0x1ff   : > { %v810_v19 = vpop.f32.mrb[2].mxu1 }
 0x200   : > { %v826_v21 = vmul.f32 %v2637_v18, %v810_v19  ;;  %v2803_v22 = vpop.f32.mrb[3].mxu1 }
 0x202   : > { %v827_v24 = vadd.f32 %v826_v21, %v821_v20  ;;  %v2656_v21 = vld [vmem:[%s3950_s9 + $0x2] ss:$0 sm:$0xff] }
 0x203   : > { %v1148_v11 = vpop.f32.mrb[4].mxu1 }
 0x204   : > { %v832_v25 = vadd.f32 %v2638_v23, %v827_v24  ;;  %v2828_v12 = vpop.f32.mrb[5].mxu1  ;;  %v1231_v18 = vmul.f32 %v2654_v15, %v1148_v11  ;;  %v2674_v11 = vld [vmem:[%s3964_s5 + $0x4] ss:$0 sm:$0xff] }
 0x205   : > { %v2675_v12 = vld [vmem:[%s3944_s17 + $0x4] ss:$0 sm:$0xff] }
 0x206   : > { %3134 = vtanh.f32 %v832_v25 }
 0x210   : > { %v3135_v26 = vpop.eup %3134 }
 0x211   : > { %838 = vrot.lane.b32.xlu0 %v3135_v26, %s3543_s25  ;;  %v834_v27 = vmul.f32 0.5, %v3135_v26 }
 0x213   : > { %v835_v28 = vadd.f32 0.5, %v834_v27 }
 0x215   : > { %v836_v32 = vmul.f32 %v835_v28, %v664_v31 }
 0x283   : > { %v839_v29 = vpop.permute.xlu0 %838 }
 0x284   : > { %v841_v30 = vmul.f32 %v839_v29, %v835_v28 }
 0x286   : > { %843 = vrot.lane.b32.xlu0 %v841_v30, %s3544_s3  ;;  %v2657_v30 = vld [vmem:[%s3953_s19 + $0x2] ss:$0 sm:$0xff] }
 0x2f8   : > { %v844_v34 = vpop.permute.xlu0 %843 }
 0x2f9   : > { %v846_v35 = vadd.f32 %v844_v34, %v836_v32 }
 0x2fb   : > { %v852_v37 = vmul.f32 %v2639_v33, %v846_v35  ;;  %870 = vst.msk [vmem:[%s3973_s30] sm:$0xff] %vm740_vm3, %v846_v35  ;;  %v2658_v33 = vld [vmem:[%s3969_s29 + $0x2] ss:$0 sm:$0xff] }
 0x2fd   : > { %v858_v38 = vadd.f32 %v2640_v36, %v852_v37  ;;  %v2661_v36 = vld [vmem:[%s3928_s1 + $0x18] sm:$0xff] }
 0x2ff   : > { %3136 = vtanh.f32 %v858_v38 }
 0x309   : > { %v3137_v40 = vpop.eup %3136 }
 0x30a   : > { %861 = vrot.lane.b32.xlu1 %v3137_v40, %s3543_s25 }
 0x37c   : > { %v862_v41 = vpop.permute.xlu1 %861 }
 0x37d   : > { %v864_v42 = vmul.f32 %v862_v41, %v835_v28 }
 0x37f   : > { %866 = vrot.lane.b32.xlu1 %v864_v42, %s3543_s25 }
 0x3f1   : > { %v867_v45 = vpop.permute.xlu1 %866 }
 0x3f2   : > { %869 = vst.msk [vmem:[%s3971_s16] sm:$0xff] %vm740_vm3, %v867_v45  ;;  %2820 = vmatmul.mubr.msk.f32.vlgmr.msra.gmra.mrb[2].mxu0 %vm740_vm3, %v867_v45 }
 0x3f3   : > { %2959 = vmatpush3.bf16.msra.mxu0 %v3977_v5  ;;  %2844 = vmatprep.mubr.msk.f32.mxu0 %vm3541_vm1, %v3542_v6 }
 0x3f4   : > { %2960 = vmatprep.subr.bf16.mxu0 %v3540_v4 }
 0x3f6   : > { %2845 = vmatmul.mubr.msk.f32.vlgmr.msra.gmra.mrb[4].mxu0 %vm666_vm2, %v2661_v36 }
 0x3f7   : > { %2962 = vmatpush3.bf16.msra.mxu0 %v3986_v10  ;;  %2855 = vmatprep.mubr.msk.f32.mxu0 %vm3541_vm1, %v3542_v6 }
 0x3f8   : > { %2963 = vmatprep.subr.bf16.mxu0 %v3540_v4 }
 0x3fb   : > { %2965 = vmatpush3.bf16.msra.mxu0 %v3993_v13 }
 0x3fc   : > { %2975 = vmatprep.subr.bf16.mxu0 %v3540_v4 }
 0x4c5   : > { %v1014_v48 = vpop.f32.mrb[2].mxu0 }
 0x4c6   : > { %v1030_v50 = vmul.f32 %v2645_v47, %v1014_v48  ;;  %v2821_v51 = vpop.f32.mrb[3].mxu0 }
 0x4c8   : > { %v1031_v53 = vadd.f32 %v1030_v50, %v1025_v49  ;;  %v2666_v49 = vld [vmem:[%s3950_s9 + $0x3] ss:$0 sm:$0xff] }
 0x4c9   : > { %v1354_v40 = vpop.f32.mrb[4].mxu0 }
 0x4ca   : > { %v1036_v54 = vadd.f32 %v2646_v52, %v1031_v53  ;;  %v2846_v41 = vpop.f32.mrb[5].mxu0  ;;  %v1437_v46 = vmul.f32 %v2664_v43, %v1354_v40  ;;  %v2684_v40 = vld [vmem:[%s3964_s5 + $0x5] ss:$0 sm:$0xff] }
 0x4cb   : > { %v2685_v41 = vld [vmem:[%s3944_s17 + $0x5] ss:$0 sm:$0xff] }
 0x4cc   : > { %3138 = vtanh.f32 %v1036_v54 }
 0x4d6   : > { %v3139_v55 = vpop.eup %3138 }
 0x4d7   : > { %1042 = vrot.lane.b32.xlu0 %v3139_v55, %s3543_s25  ;;  %v1038_v56 = vmul.f32 0.5, %v3139_v55 }
 0x4d9   : > { %v1039_v57 = vadd.f32 0.5, %v1038_v56 }
 0x4db   : > { %v1040_v60 = vmul.f32 %v1039_v57, %v846_v35 }
 0x549   : > { %v1043_v58 = vpop.permute.xlu0 %1042 }
 0x54a   : > { %v1045_v59 = vmul.f32 %v1043_v58, %v1039_v57  ;;  %v2667_v58 = vld [vmem:[%s3953_s19 + $0x3] ss:$0 sm:$0xff] }
 0x54c   : > { %1047 = vrot.lane.b32.xlu1 %v1045_v59, %s3544_s3 }
 0x5be   : > { %v1048_v62 = vpop.permute.xlu1 %1047 }
 0x5bf   : > { %v1050_v63 = vadd.f32 %v1048_v62, %v1040_v60 }
 0x5c1   : > { %v1056_v1 = vmul.f32 %v2647_v61, %v1050_v63  ;;  %2650 = vst.msk [vmem:[%s3973_s30 + $0x8] sm:$0xff] %vm740_vm3, %v1050_v63  ;;  %v2668_v61 = vld [vmem:[%s3969_s29 + $0x3] ss:$0 sm:$0xff] }
 0x5c3   : > { %v1062_v2 = vadd.f32 %v2648_v0, %v1056_v1  ;;  %v2671_v0 = vld [vmem:[%s3928_s1 + $0x20] sm:$0xff] }
 0x5c5   : > { %3140 = vtanh.f32 %v1062_v2 }
 0x5cf   : > { %v3141_v7 = vpop.eup %3140 }
 0x5d0   : > { %1065 = vrot.lane.b32.xlu0 %v3141_v7, %s3543_s25 }
 0x642   : > { %v1066_v8 = vpop.permute.xlu0 %1065 }
 0x643   : > { %v1068_v9 = vmul.f32 %v1066_v8, %v1039_v57 }
 0x645   : > { %1070 = vrot.lane.b32.xlu1 %v1068_v9, %s3543_s25 }
 0x6b7   : > { %v1071_v14 = vpop.permute.xlu1 %1070 }
 0x6b8   : > { %2649 = vst.msk [vmem:[%s3971_s16 + $0x8] sm:$0xff] %vm740_vm3, %v1071_v14  ;;  %2838 = vmatmul.mubr.msk.f32.vlgmr.msra.gmra.mrb[6].mxu1 %vm740_vm3, %v1071_v14 }
 0x6b9   : > { %2968 = vmatpush3.bf16.msra.mxu1 %v3977_v5  ;;  %2862 = vmatprep.mubr.msk.f32.mxu1 %vm3541_vm1, %v3542_v6 }
 0x6ba   : > { %2969 = vmatprep.subr.bf16.mxu1 %v3540_v4 }
 0x6bc   : > { %2863 = vmatmul.mubr.msk.f32.vlgmr.msra.gmra.mrb[8].mxu1 %vm666_vm2, %v2671_v0 }
 0x6bd   : > { %2971 = vmatpush3.bf16.msra.mxu1 %v3986_v10  ;;  %2873 = vmatprep.mubr.msk.f32.mxu1 %vm3541_vm1, %v3542_v6 }
 0x6be   : > { %2972 = vmatprep.subr.bf16.mxu1 %v3540_v4 }
 0x6c1   : > { %2974 = vmatpush3.bf16.msra.mxu1 %v3993_v13 }
 0x6c2   : > { %2984 = vmatprep.subr.bf16.mxu1 %v3540_v4 }
 0x78b   : > { %v1220_v17 = vpop.f32.mrb[6].mxu1 }
 0x78c   : > { %v1236_v19 = vmul.f32 %v2655_v16, %v1220_v17  ;;  %v2839_v20 = vpop.f32.mrb[7].mxu1 }
 0x78e   : > { %v1237_v22 = vadd.f32 %v1236_v19, %v1231_v18  ;;  %v2676_v18 = vld [vmem:[%s3950_s9 + $0x4] ss:$0 sm:$0xff] }
 0x78f   : > { %v1560_v7 = vpop.f32.mrb[8].mxu1 }
 0x790   : > { %v1242_v23 = vadd.f32 %v2656_v21, %v1237_v22  ;;  %v2864_v8 = vpop.f32.mrb[9].mxu1  ;;  %v1643_v15 = vmul.f32 %v2674_v11, %v1560_v7  ;;  %v2695_v7 = vld [vmem:[%s3944_s17 + $0x6] ss:$0 sm:$0xff] }
 0x792   : > { %3142 = vtanh.f32 %v1242_v23 }
 0x79c   : > { %v3143_v24 = vpop.eup %3142 }
 0x79d   : > { %1248 = vrot.lane.b32.xlu0 %v3143_v24, %s3543_s25  ;;  %v1244_v25 = vmul.f32 0.5, %v3143_v24 }
 0x79f   : > { %v1245_v26 = vadd.f32 0.5, %v1244_v25 }
 0x7a1   : > { %v1246_v29 = vmul.f32 %v1245_v26, %v1050_v63 }
 0x80f   : > { %v1249_v27 = vpop.permute.xlu0 %1248 }
 0x810   : > { %v1251_v28 = vmul.f32 %v1249_v27, %v1245_v26  ;;  %v2677_v27 = vld [vmem:[%s3953_s19 + $0x4] ss:$0 sm:$0xff] }
 0x812   : > { %1253 = vrot.lane.b32.xlu1 %v1251_v28, %s3544_s3 }
 0x884   : > { %v1254_v31 = vpop.permute.xlu1 %1253 }
 0x885   : > { %v1256_v32 = vadd.f32 %v1254_v31, %v1246_v29 }
 0x887   : > { %v1262_v34 = vmul.f32 %v2657_v30, %v1256_v32  ;;  %2660 = vst.msk [vmem:[%s3973_s30 + $0x10] sm:$0xff] %vm740_vm3, %v1256_v32  ;;  %v2678_v30 = vld [vmem:[%s3969_s29 + $0x4] ss:$0 sm:$0xff] }
 0x889   : > { %v1268_v35 = vadd.f32 %v2658_v33, %v1262_v34  ;;  %v2681_v33 = vld [vmem:[%s3928_s1 + $0x28] sm:$0xff] }
 0x88b   : > { %3144 = vtanh.f32 %v1268_v35 }
 0x895   : > { %v3145_v37 = vpop.eup %3144 }
 0x896   : > { %1271 = vrot.lane.b32.xlu0 %v3145_v37, %s3543_s25 }
 0x908   : > { %v1272_v38 = vpop.permute.xlu0 %1271 }
 0x909   : > { %v1274_v39 = vmul.f32 %v1272_v38, %v1245_v26 }
 0x90b   : > { %1276 = vrot.lane.b32.xlu1 %v1274_v39, %s3543_s25 }
 0x97d   : > { %v1277_v42 = vpop.permute.xlu1 %1276 }
 0x97e   : > { %2659 = vst.msk [vmem:[%s3971_s16 + $0x10] sm:$0xff] %vm740_vm3, %v1277_v42  ;;  %2856 = vmatmul.mubr.msk.f32.vlgmr.msra.gmra.mrb[6].mxu0 %vm740_vm3, %v1277_v42 }
 0x97f   : > { %2977 = vmatpush3.bf16.msra.mxu0 %v3977_v5  ;;  %2880 = vmatprep.mubr.msk.f32.mxu0 %vm3541_vm1, %v3542_v6 }
 0x980   : > { %2978 = vmatprep.subr.bf16.mxu0 %v3540_v4 }
 0x982   : > { %2881 = vmatmul.mubr.msk.f32.vlgmr.msra.gmra.mrb[8].mxu0 %vm666_vm2, %v2681_v33 }
 0x983   : > { %2980 = vmatpush3.bf16.msra.mxu0 %v3986_v10  ;;  %2891 = vmatprep.mubr.msk.f32.mxu0 %vm3541_vm1, %v3542_v6 }
 0x984   : > { %2981 = vmatprep.subr.bf16.mxu0 %v3540_v4 }
 0x987   : > { %2983 = vmatpush3.bf16.msra.mxu0 %v3993_v13 }
 0x988   : > { %2993 = vmatprep.subr.bf16.mxu0 %v3540_v4 }
 0xa51   : > { %v1426_v45 = vpop.f32.mrb[6].mxu0 }
 0xa52   : > { %v1442_v47 = vmul.f32 %v2665_v44, %v1426_v45  ;;  %v2857_v48 = vpop.f32.mrb[7].mxu0 }
 0xa54   : > { %v1443_v50 = vadd.f32 %v1442_v47, %v1437_v46  ;;  %v2686_v46 = vld [vmem:[%s3950_s9 + $0x5] ss:$0 sm:$0xff] }
 0xa55   : > { %v1766_v37 = vpop.f32.mrb[8].mxu0 }
 0xa56   : > { %v1448_v51 = vadd.f32 %v2666_v49, %v1443_v50  ;;  %v2882_v38 = vpop.f32.mrb[9].mxu0  ;;  %v1849_v43 = vmul.f32 %v2684_v40, %v1766_v37 }
 0xa57   : > { %v2706_v38 = vld [vmem:[%s3950_s9 + $0x7] ss:$0 sm:$0xff] }
 0xa58   : > { %3146 = vtanh.f32 %v1448_v51 }
 0xa62   : > { %v3147_v52 = vpop.eup %3146 }
 0xa63   : > { %1454 = vrot.lane.b32.xlu0 %v3147_v52, %s3543_s25  ;;  %v1450_v53 = vmul.f32 0.5, %v3147_v52 }
 0xa65   : > { %v1451_v54 = vadd.f32 0.5, %v1450_v53 }
 0xa67   : > { %v1452_v57 = vmul.f32 %v1451_v54, %v1256_v32 }
 0xad5   : > { %v1455_v55 = vpop.permute.xlu0 %1454 }
 0xad6   : > { %v1457_v56 = vmul.f32 %v1455_v55, %v1451_v54 }
 0xad8   : > { %1459 = vrot.lane.b32.xlu1 %v1457_v56, %s3544_s3 }
 0xb4a   : > { %v1460_v59 = vpop.permute.xlu1 %1459 }
 0xb4b   : > { %v1462_v60 = vadd.f32 %v1460_v59, %v1452_v57  ;;  %v2688_v57 = vld [vmem:[%s3969_s29 + $0x5] ss:$0 sm:$0xff] }
 0xb4d   : > { %v1468_v62 = vmul.f32 %v2667_v58, %v1462_v60  ;;  %2670 = vst.msk [vmem:[%s3973_s30 + $0x18] sm:$0xff] %vm740_vm3, %v1462_v60 }
 0xb4f   : > { %v1474_v63 = vadd.f32 %v2668_v61, %v1468_v62 }
 0xb51   : > { %3148 = vtanh.f32 %v1474_v63 }
 0xb5b   : > { %v3149_v1 = vpop.eup %3148 }
 0xb5c   : > { %1477 = vrot.lane.b32.xlu0 %v3149_v1, %s3543_s25 }
 0xbce   : > { %v1478_v2 = vpop.permute.xlu0 %1477 }
 0xbcf   : > { %v1480_v3 = vmul.f32 %v1478_v2, %v1451_v54  ;;  %v2687_v54 = vld [vmem:[%s3953_s19 + $0x5] ss:$0 sm:$0xff] }
 0xbd1   : > { %1482 = vrot.lane.b32.xlu1 %v1480_v3, %s3543_s25  ;;  %v2694_v3 = vld [vmem:[%s3964_s5 + $0x6] ss:$0 sm:$0xff] }
 0xc43   : > { %v1483_v9 = vpop.permute.xlu1 %1482 }
 0xc44   : > { %2669 = vst.msk [vmem:[%s3971_s16 + $0x18] sm:$0xff] %vm740_vm3, %v1483_v9  ;;  %2874 = vmatmul.mubr.msk.f32.vlgmr.msra.gmra.mrb[10].mxu1 %vm740_vm3, %v1483_v9 }
 0xc45   : > { %2986 = vmatpush3.bf16.msra.mxu1 %v3977_v5  ;;  %2898 = vmatprep.mubr.msk.f32.mxu1 %vm3541_vm1, %v3542_v6 }
 0xc46   : > { %2987 = vmatprep.subr.bf16.mxu1 %v3540_v4 }
 0xd17   : > { %v1632_v14 = vpop.f32.mrb[10].mxu1 }
 0xd18   : > { %v1648_v16 = vmul.f32 %v2675_v12, %v1632_v14  ;;  %v2875_v17 = vpop.f32.mrb[11].mxu1  ;;  %v2696_v14 = vld [vmem:[%s3950_s9 + $0x6] ss:$0 sm:$0xff]  ;;  %s4376_s9 = sld [smem:[#allocation42_spill]] }
 0xd1a   : > { %v1649_v19 = vadd.f32 %v1648_v16, %v1643_v15 }
 0xd1c   : > { %v1654_v20 = vadd.f32 %v2676_v18, %v1649_v19 }
 0xd1e   : > { %3150 = vtanh.f32 %v1654_v20 }
 0xd28   : > { %v3151_v21 = vpop.eup %3150 }
 0xd29   : > { %1660 = vrot.lane.b32.xlu0 %v3151_v21, %s3543_s25  ;;  %v1656_v22 = vmul.f32 0.5, %v3151_v21 }
 0xd2b   : > { %v1657_v23 = vadd.f32 0.5, %v1656_v22 }
 0xd2d   : > { %v1658_v26 = vmul.f32 %v1657_v23, %v1462_v60  ;;  %v2691_v60 = vld [vmem:[%s3928_s1 + $0x30] sm:$0xff] }
 0xd2e   : > { %2899 = vmatmul.mubr.msk.f32.vlgmr.msra.gmra.mrb[12].mxu1 %vm666_vm2, %v2691_v60 }
 0xd2f   : > { %2989 = vmatpush3.bf16.msra.mxu1 %v3986_v10  ;;  %2909 = vmatprep.mubr.msk.f32.mxu1 %vm3541_vm1, %v3542_v6 }
 0xd30   : > { %2990 = vmatprep.subr.bf16.mxu1 %v3540_v4 }
 0xd33   : > { %2992 = vmatpush3.bf16.msra.mxu1 %v3993_v13 }
 0xd9b   : > { %v1661_v24 = vpop.permute.xlu0 %1660 }
 0xd9c   : > { %v1663_v25 = vmul.f32 %v1661_v24, %v1657_v23 }
 0xd9e   : > { %1665 = vrot.lane.b32.xlu1 %v1663_v25, %s3544_s3 }
 0xe01   : > { %v1972_v0 = vpop.f32.mrb[12].mxu1 }
 0xe02   : > { %v2900_v1 = vpop.f32.mrb[13].mxu1  ;;  %v2055_v9 = vmul.f32 %v2694_v3, %v1972_v0 }
 0xe10   : > { %v1666_v28 = vpop.permute.xlu1 %1665 }
 0xe11   : > { %v1668_v29 = vadd.f32 %v1666_v28, %v1658_v26  ;;  %v2698_v26 = vld [vmem:[%s3969_s29 + $0x6] ss:$0 sm:$0xff] }
 0xe13   : > { %v1674_v31 = vmul.f32 %v2677_v27, %v1668_v29  ;;  %2680 = vst.msk [vmem:[%s3973_s30 + $0x20] sm:$0xff] %vm740_vm3, %v1668_v29 }
 0xe15   : > { %v1680_v32 = vadd.f32 %v2678_v30, %v1674_v31 }
 0xe17   : > { %3152 = vtanh.f32 %v1680_v32 }
 0xe21   : > { %v3153_v34 = vpop.eup %3152 }
 0xe22   : > { %1683 = vrot.lane.b32.xlu0 %v3153_v34, %s3543_s25 }
 0xe94   : > { %v1684_v35 = vpop.permute.xlu0 %1683 }
 0xe95   : > { %v1686_v36 = vmul.f32 %v1684_v35, %v1657_v23  ;;  %v2697_v23 = vld [vmem:[%s3953_s19 + $0x6] ss:$0 sm:$0xff] }
 0xe97   : > { %1688 = vrot.lane.b32.xlu1 %v1686_v36, %s3543_s25 }
 0xf09   : > { %v1689_v39 = vpop.permute.xlu1 %1688 }
 0xf0a   : > { %2679 = vst.msk [vmem:[%s3971_s16 + $0x20] sm:$0xff] %vm740_vm3, %v1689_v39  ;;  %2892 = vmatmul.mubr.msk.f32.vlgmr.msra.gmra.mrb[10].mxu0 %vm740_vm3, %v1689_v39 }
 0xf0b   : > { %2995 = vmatpush3.bf16.msra.mxu0 %v3977_v5  ;;  %2916 = vmatprep.mubr.msk.f32.mxu0 %vm3541_vm1, %v3542_v6 }
 0xf0c   : > { %2996 = vmatprep.subr.bf16.mxu0 %v3540_v4 }
 0xfdd   : > { %v1838_v42 = vpop.f32.mrb[10].mxu0 }
 0xfde   : > { %v1854_v44 = vmul.f32 %v2685_v41, %v1838_v42  ;;  %v2893_v45 = vpop.f32.mrb[11].mxu0 }
 0xfe0   : > { %v1855_v47 = vadd.f32 %v1854_v44, %v1849_v43 }
 0xfe2   : > { %v1860_v48 = vadd.f32 %v2686_v46, %v1855_v47  ;;  %v2707_v47 = vld [vmem:[%s3953_s19 + $0x7] ss:$0 sm:$0xff]  ;;  %s2352_s19 = sshll.u32 %s3973_s30, 4  ;;  %s4197_s19 = int_to_ptr.vmem [resolvable:$true] %s2352_s19 }
 0xfe3   : > { %s3398_s26 = scalar_lea.vmem %s4197_s19, 1024  ;;  %p3405_p10 = scmp.lt.s32.totalorder %s4197_s19, %s3403_s11 }
 0xfe4   : > { %3154 = vtanh.f32 %v1860_v48  ;;  %p3399_p3 = scmp.ne.s32.totalorder %s4197_s19, %s3398_s26  ;;  %p3406_p12 = scmp.lt.s32.totalorder %s3404_s22, %s3398_s26 }
 0xfe6   : > { %p3400_p8 = pnand %p3399_p3, %p4377_p0  ;;  %p3407_p5 = por %p3406_p12, %p3405_p10 }
 0xfe8   : > { %p3401_p4 = pneg %p3400_p8 }
 0xfea   : > { %p3408_p13 = pnand %p3407_p5, %p3401_p4 }
 0xfee   : > { %v3155_v49 = vpop.eup %3154 }
 0xfef   : > { %1866 = vrot.lane.b32.xlu0 %v3155_v49, %s3543_s25  ;;  %v1862_v5 = vmul.f32 0.5, %v3155_v49 }
 0xff1   : > { %v1863_v50 = vadd.f32 0.5, %v1862_v5  ;;  %v2708_v5 = vld [vmem:[%s3969_s29 + $0x7] ss:$0 sm:$0xff] }
 0xff3   : > { %v1864_v53 = vmul.f32 %v1863_v50, %v1668_v29  ;;  %v2701_v29 = vld [vmem:[%s3928_s1 + $0x38] sm:$0xff]  ;;  %s4374_s1 = sld [smem:[#allocation30_spill]] }
 0xff4   : > { %2917 = vmatmul.mubr.msk.f32.vlgmr.msra.gmra.mrb[12].mxu0 %vm666_vm2, %v2701_v29 }
 0xff5   : > { %2998 = vmatpush3.bf16.msra.mxu0 %v3986_v10  ;;  %2927 = vmatprep.mubr.msk.f32.mxu0 %vm3541_vm1, %v3542_v6  ;;  %v2704_v6 = vld [vmem:[%s3964_s5 + $0x7] ss:$0 sm:$0xff]  ;;  %v2705_v10 = vld [vmem:[%s3944_s17 + $0x7] ss:$0 sm:$0xff] }
 0xff6   : > { %2999 = vmatprep.subr.bf16.mxu0 %v3540_v4 }
 0xff9   : > { %3001 = vmatpush3.bf16.msra.mxu0 %v3993_v13  ;;  %s2720_s12 = sshll.u32 %s4374_s1, 10 }
 0xffa   : > { %s4194_s20 = scalar_lea.hbm %s4376_s9, %s2720_s12 }
0x1061   : > { %v1867_v51 = vpop.permute.xlu0 %1866 }
0x1062   : > { %v1869_v52 = vmul.f32 %v1867_v51, %v1863_v50 }
0x1064   : > { %1871 = vrot.lane.b32.xlu1 %v1869_v52, %s3544_s3 }
0x10c7   : > { %v2178_v33 = vpop.f32.mrb[12].mxu0 }
0x10c8   : > { %v2918_v34 = vpop.f32.mrb[13].mxu0  ;;  %v2261_v13 = vmul.f32 %v2704_v6, %v2178_v33 }
0x10d6   : > { %v1872_v55 = vpop.permute.xlu1 %1871 }
0x10d7   : > { %v1874_v56 = vadd.f32 %v1872_v55, %v1864_v53 }
0x10d9   : > { %v1880_v58 = vmul.f32 %v2687_v54, %v1874_v56  ;;  %2690 = vst.msk [vmem:[%s3973_s30 + $0x28] sm:$0xff] %vm740_vm3, %v1874_v56 }
0x10db   : > { %v1886_v59 = vadd.f32 %v2688_v57, %v1880_v58 }
0x10dd   : > { %3156 = vtanh.f32 %v1886_v59 }
0x10e7   : > { %v3157_v61 = vpop.eup %3156 }
0x10e8   : > { %1889 = vrot.lane.b32.xlu0 %v3157_v61, %s3543_s25 }
0x115a   : > { %v1890_v62 = vpop.permute.xlu0 %1889 }
0x115b   : > { %v1892_v63 = vmul.f32 %v1890_v62, %v1863_v50 }
0x115d   : > { %1894 = vrot.lane.b32.xlu1 %v1892_v63, %s3543_s25 }
0x11cf   : > { %v1895_v2 = vpop.permute.xlu1 %1894 }
0x11d0   : > { %2689 = vst.msk [vmem:[%s3971_s16 + $0x28] sm:$0xff] %vm740_vm3, %v1895_v2  ;;  %2910 = vmatmul.mubr.msk.f32.vlgmr.msra.gmra.mrb[14].mxu1 %vm740_vm3, %v1895_v2 }
0x12a3   : > { %v2044_v8 = vpop.f32.mrb[14].mxu1 }
0x12a4   : > { %v2060_v11 = vmul.f32 %v2695_v7, %v2044_v8  ;;  %v2911_v12 = vpop.f32.mrb[15].mxu1 }
0x12a6   : > { %v2061_v15 = vadd.f32 %v2060_v11, %v2055_v9 }
0x12a8   : > { %v2066_v16 = vadd.f32 %v2696_v14, %v2061_v15 }
0x12aa   : > { %3158 = vtanh.f32 %v2066_v16 }
0x12b4   : > { %v3159_v17 = vpop.eup %3158 }
0x12b5   : > { %2072 = vrot.lane.b32.xlu0 %v3159_v17, %s3543_s25  ;;  %v2068_v18 = vmul.f32 0.5, %v3159_v17 }
0x12b7   : > { %v2069_v19 = vadd.f32 0.5, %v2068_v18 }
0x12b9   : > { %v2070_v22 = vmul.f32 %v2069_v19, %v1874_v56 }
0x1327   : > { %v2073_v20 = vpop.permute.xlu0 %2072 }
0x1328   : > { %v2075_v21 = vmul.f32 %v2073_v20, %v2069_v19 }
0x132a   : > { %2077 = vrot.lane.b32.xlu1 %v2075_v21, %s3544_s3 }
0x139c   : > { %v2078_v24 = vpop.permute.xlu1 %2077 }
0x139d   : > { %v2080_v25 = vadd.f32 %v2078_v24, %v2070_v22 }
0x139f   : > { %v2086_v27 = vmul.f32 %v2697_v23, %v2080_v25  ;;  %2700 = vst.msk [vmem:[%s3973_s30 + $0x30] sm:$0xff] %vm740_vm3, %v2080_v25 }
0x13a1   : > { %v2092_v28 = vadd.f32 %v2698_v26, %v2086_v27 }
0x13a3   : > { %3160 = vtanh.f32 %v2092_v28 }
0x13ad   : > { %v3161_v30 = vpop.eup %3160 }
0x13ae   : > { %2095 = vrot.lane.b32.xlu0 %v3161_v30, %s3543_s25 }
0x1420   : > { %v2096_v31 = vpop.permute.xlu0 %2095 }
0x1421   : > { %v2098_v32 = vmul.f32 %v2096_v31, %v2069_v19 }
0x1423   : > { %2100 = vrot.lane.b32.xlu1 %v2098_v32, %s3543_s25 }
0x1495   : > { %v2101_v35 = vpop.permute.xlu1 %2100 }
0x1496   : > { %2699 = vst.msk [vmem:[%s3971_s16 + $0x30] sm:$0xff] %vm740_vm3, %v2101_v35  ;;  %2928 = vmatmul.mubr.msk.f32.vlgmr.msra.gmra.mrb[14].mxu0 %vm740_vm3, %v2101_v35 }
0x1569   : > { %v2250_v4 = vpop.f32.mrb[14].mxu0 }
0x156a   : > { %v2266_v36 = vmul.f32 %v2705_v10, %v2250_v4  ;;  %v2929_v37 = vpop.f32.mrb[15].mxu0 }
0x156c   : > { %v2267_v39 = vadd.f32 %v2266_v36, %v2261_v13 }
0x156e   : > { %v2272_v40 = vadd.f32 %v2706_v38, %v2267_v39 }
0x1570   : > { %3162 = vtanh.f32 %v2272_v40 }
0x157a   : > { %v3163_v41 = vpop.eup %3162 }
0x157b   : > { %2278 = vrot.lane.b32.xlu0 %v3163_v41, %s3543_s25  ;;  %v2274_v42 = vmul.f32 0.5, %v3163_v41 }
0x157d   : > { %v2275_v43 = vadd.f32 0.5, %v2274_v42 }
0x157f   : > { %v2276_v46 = vmul.f32 %v2275_v43, %v2080_v25 }
0x15ed   : > { %v2279_v44 = vpop.permute.xlu0 %2278 }
0x15ee   : > { %v2281_v45 = vmul.f32 %v2279_v44, %v2275_v43 }
0x15f0   : > { %2283 = vrot.lane.b32.xlu1 %v2281_v45, %s3544_s3 }
0x1662   : > { %v2284_v48 = vpop.permute.xlu1 %2283 }
0x1663   : > { %v2286_v49 = vadd.f32 %v2284_v48, %v2276_v46 }
0x1665   : > { %v2292_v50 = vmul.f32 %v2707_v47, %v2286_v49  ;;  %2710 = vst.msk [vmem:[%s3973_s30 + $0x38] sm:$0xff] %vm740_vm3, %v2286_v49  ;;  %2314 = vst.msk [vmem:[#allocation3] sm:$0xff] %vm740_vm3, %v2286_v49 }
0x1667   : > { %v2298_v51 = vadd.f32 %v2708_v5, %v2292_v50 }
0x1669   : > { %3164 = vtanh.f32 %v2298_v51 }
0x1673   : > { %v3165_v52 = vpop.eup %3164 }
0x1674   : > { %2301 = vrot.lane.b32.xlu0 %v3165_v52, %s3543_s25 }
0x1675   : > { %3411 = shalt.err (!%p3408_p13)
}
0x1676   : > { %s3412_s28 = scalar_lea.hbm %s4194_s20, 1024  ;;  %s3416_s14 = scalar_lea.hbm %s4376_s9, 2048 }
0x1677   : > { %p3413_p6 = scmp.ne.s32.totalorder %s4194_s20, %s3412_s28  ;;  %p3417_p11 = scmp.lt.u32.totalorder %s4194_s20, %s4376_s9 }
0x1678   : > { %p3418_p9 = scmp.lt.u32.totalorder %s3416_s14, %s3412_s28  ;;  %p3420_p3 = scmp.lt.u32.totalorder %s3412_s28, %s4194_s20 }
0x1679   : > { %p3414_p2 = pnand %p3413_p6, %p4377_p0 }
0x167a   : > { %p3419_p1 = por %p3418_p9, %p3417_p11 }
0x167b   : > { %p3415_p7 = pneg %p3414_p2 }
0x167c   : > { %p3421_p8 = por %p3420_p3, %p3419_p1 }
0x167e   : > { %p3422_p4 = pnand %p3421_p8, %p3415_p7 }
0x1680   : > { %3425 = shalt.err (!%p3422_p4)
}
0x1681   : > { %s3546_s30 = smov 128   ;;  %s3547_s3 = smov 8  }
0x1682   : > { %3027 = dma.vmem_to_hbm [thread:$0]  (%p4377_p0), %s4197_s19, 1024, %s4194_s20, %s2321_s23, %s3546_s30, %s3546_s30, %s3547_s3  }
0x1683   : > { %s2335_s6 = sshll.u32 %s3971_s16, 4  ;;  %s4378_s13 = sld [smem:[#allocation41_spill]]  ;;  %s4235_s6 = int_to_ptr.vmem [resolvable:$true] %s2335_s6 }
0x1684   : > { %s2316_s20 = scalar_lea.sflag [#allocation6], %s3924_s24  ;;  %s3426_s19 = scalar_lea.vmem %s4235_s6, 1024 }
0x1685   : > { %p3427_p10 = scmp.ne.s32.totalorder %s4235_s6, %s3426_s19 }
0x1687   : > { %p3428_p12 = pnand %p3427_p10, %p4377_p0 }
0x1689   : > { %s4233_s11 = scalar_lea.hbm %s4378_s13, %s2720_s12  ;;  %p3429_p5 = pneg %p3428_p12 }
0x16e6   : > { %v2302_v53 = vpop.permute.xlu0 %2301 }
0x16e7   : > { %v2304_v54 = vmul.f32 %v2302_v53, %v2275_v43 }
0x16e9   : > { %2306 = vrot.lane.b32.xlu1 %v2304_v54, %s3543_s25  ;;  %s3548_s25 = smov [#allocation18]  }
0x16ea   : > { %s3430_s1 = sshll.u32 %s3548_s25, 4  ;;  %s3431_s1 = int_to_ptr.vmem [resolvable:$false] %s3430_s1 }
0x16eb   : > { %s3432_s12 = scalar_lea.vmem %s3431_s1, 2048  ;;  %p3433_p13 = scmp.lt.s32.totalorder %s4235_s6, %s3431_s1 }
0x16ec   : > { %p3434_p6 = scmp.lt.s32.totalorder %s3432_s12, %s3426_s19 }
0x16ee   : > { %p3435_p2 = por %p3434_p6, %p3433_p13 }
0x16f0   : > { %p3436_p7 = pnand %p3435_p2, %p3429_p5 }
0x175b   : > { %v2307_v55 = vpop.permute.xlu1 %2306 }
0x175c   : > { %2709 = vst.msk [vmem:[%s3971_s16 + $0x38] sm:$0xff] %vm740_vm3, %v2307_v55  ;;  %2313 = vst.msk [vmem:[#allocation2] sm:$0xff] %vm740_vm3, %v2307_v55 }
0x175d   : > { %3439 = shalt.err (!%p3436_p7)
}
0x175e   : > { %s3440_s16 = scalar_lea.hbm %s4233_s11, 1024  ;;  %s3444_s28 = scalar_lea.hbm %s4378_s13, 2048 }
0x175f   : > { %p3441_p11 = scmp.ne.s32.totalorder %s4233_s11, %s3440_s16  ;;  %p3445_p3 = scmp.lt.u32.totalorder %s4233_s11, %s4378_s13 }
0x1760   : > { %p3446_p8 = scmp.lt.u32.totalorder %s3444_s28, %s3440_s16  ;;  %p3448_p10 = scmp.lt.u32.totalorder %s3440_s16, %s4233_s11 }
0x1761   : > { %p3442_p9 = pnand %p3441_p11, %p4377_p0 }
0x1762   : > { %p3447_p4 = por %p3446_p8, %p3445_p3 }
0x1763   : > { %p3443_p1 = pneg %p3442_p9 }
0x1764   : > { %p3449_p12 = por %p3448_p10, %p3447_p4 }
0x1766   : > { %p3450_p5 = pnand %p3449_p12, %p3443_p1 }
0x1768   : > { %3453 = shalt.err (!%p3450_p5)
}
0x1769   : > { %3026 = dma.vmem_to_hbm [thread:$0]  (%p4377_p0), %s4235_s6, 1024, %s4233_s11, %s2316_s20, %s3546_s30, %s3546_s30, %s3547_s3  }
0x176a PF: > { %s4379_s14 = sld [smem:[#allocation28_spill]]  ;;  %s4380_s15 = sld [smem:[#allocation32_spill]] }
0x176b   : > { %s4381_s29 = sld [smem:[#allocation31_spill]] }
0x1770   : > { %s2367_s17 = sand.u32 1, %s4379_s14   ;;  %p4382_p13 = scmp.ne.s32.totalorder %s4380_s15, 0 }
0x1771   : > { %p4383_p6 = scmp.ge.s32.totalorder %s4381_s29, 2  ;;  %s2368_s26 = scalar_lea.sflag [#allocation6], %s2367_s17 }
0x1773   : > { %p3057_p2 = pnand %p4383_p6, %p4382_p13 }
0x1775   : > { %3499 = dma.done.wait (!%p3057_p2), %s2368_s26, 1024  }
0x1776   : > { %3501 = vsyncadd (!%p3057_p2), %s2368_s26, 4294966272  ;;  %s2377_s27 = scalar_lea.sflag [#allocation20], %s2367_s17 }
0x1777   : > { %3503 = dma.done.wait (!%p3057_p2), %s2377_s27, 1024  }
0x1778   : > { %3505 = vsyncadd (!%p3057_p2), %s2377_s27, 4294966272  ;;  %s39_s22 = sadd.s32 1, %s4381_s29   ;;  %s4384_s24 = sld [smem:[#allocation29_spill]] }
0x1779   : > { %p36_p7 = scmp.ge.s32.totalorder %s39_s22, 4   ;;  %s4385_s19 = sld [smem:[#allocation35_spill]] }
0x177a   : > { %s4386_s30 = sld [smem:[#allocation33_spill]]  ;;  %s4387_s17 = smov %s3512_s18 }
0x177b   : > { %s4389_s20 = smov %s3524_s21  ;;  %38 = sbr.rel (!%p36_p7) target bundleno = 22 (0x16), region = 208 }
0x177e   : > { %s4388_s18 = smov %s4384_s24 }
0x1780   : > { %s4390_s21 = smov %s4386_s30 }
0x1782   :  { %2382 = vsyncpa [#allocation5], 1 }
0x1783   :  { %2384 = vsyncpa [#allocation5 + $0x1], 1 }
0x1784   :  { %2385 = vsyncpa [#allocation8], 1 }
0x1785   :  { %2386 = vsyncpa [#allocation11], 1 }
0x1786   :  { %2387 = vsyncpa [#allocation14], 1 }
0x1787   :  { %2389 = vsyncpa [#allocation14 + $0x1], 1 }
0x1788   :  { %2390 = vsyncpa [#allocation17], 1 }
0x1789   :  { %2392 = vsyncpa [#allocation17 + $0x1], 1 }
0x178a   :  { %2393 = vsyncpa [#allocation6], 1 }
0x178b   :  { %2395 = vsyncpa [#allocation6 + $0x1], 1 }
0x178c   :  { %2396 = vsyncpa [#allocation20], 1 }
0x178d   :  { %2398 = vsyncpa [#allocation20 + $0x1], 1 }

</bundles_post_ra>
